<compile_context>
chip_gen: v6e
topology: v6e:2x2x1
jax: 0.10.0
libtpu: 0.0.40
codegen_flags: <defaults>
</compile_context>

<pallas_src>
import functools

import jax
import jax.numpy as jnp
import numpy as np
from jax import lax
from jax.experimental import pallas as pl
from jax.experimental.pallas import tpu as pltpu

MASK_VALUE = -0.7 * float(np.finfo(np.float32).max)
MiB = 1024 * 1024


def _pick_tile(dim, target):
    """Largest tile <= target that divides `dim` and is a multiple of 128
    (falls back to the full dim, which is always a legal block)."""
    if dim <= target:
        return dim
    t = (target // 128) * 128
    while t >= 128:
        if dim % t == 0:
            return t
        t -= 128
    return dim


def _is_v5e():
    try:
        kind = jax.devices()[0].device_kind.lower()
    except Exception:
        return False
    kind_ns = kind.replace(" ", "")
    return ("v5e" in kind_ns) or ("v5lite" in kind_ns)


# -------------------- tiled linear (bf16 MXU, f32 accumulate) ----------------
def _matmul_kernel(x_ref, w_ref, o_ref, acc_ref):
    @pl.when(pl.program_id(2) == 0)
    def _():
        acc_ref[...] = jnp.zeros_like(acc_ref)

    acc_ref[...] += jnp.dot(x_ref[...], w_ref[...],
                            preferred_element_type=jnp.float32)

    @pl.when(pl.program_id(2) == pl.num_programs(2) - 1)
    def _():
        o_ref[...] = acc_ref[...].astype(o_ref.dtype)


def _matmul_bias_kernel(x_ref, w_ref, b_ref, o_ref, acc_ref):
    @pl.when(pl.program_id(2) == 0)
    def _():
        acc_ref[...] = jnp.zeros_like(acc_ref)

    acc_ref[...] += jnp.dot(x_ref[...], w_ref[...],
                            preferred_element_type=jnp.float32)

    @pl.when(pl.program_id(2) == pl.num_programs(2) - 1)
    def _():
        o_ref[...] = (acc_ref[...] + b_ref[...]).astype(o_ref.dtype)


def pallas_linear(x2d, w_t, bias=None, *, out_dtype=None,
                  tm_target=512, tn_target=512, tk_target=1024):
    """y = x2d @ w_t (+ bias).  Operands are cast to bf16 for the MXU; the
    accumulator is f32 in VMEM; `out_dtype` controls the HBM output dtype."""
    M, K = x2d.shape
    Nout = w_t.shape[1]
    if out_dtype is None:
        out_dtype = x2d.dtype

    xb = x2d.astype(jnp.bfloat16)
    wb = w_t.astype(jnp.bfloat16)

    tm = _pick_tile(M, tm_target)
    tn = _pick_tile(Nout, tn_target)
    tk = _pick_tile(K, tk_target)
    grid = (M // tm, Nout // tn, K // tk)

    x_spec = pl.BlockSpec((tm, tk), lambda i, j, k: (i, k))
    w_spec = pl.BlockSpec((tk, tn), lambda i, j, k: (k, j))
    o_spec = pl.BlockSpec((tm, tn), lambda i, j, k: (i, j))
    scratch = [pltpu.VMEM((tm, tn), jnp.float32)]
    cp = pltpu.CompilerParams(
        dimension_semantics=("parallel", "parallel", "arbitrary"),
        vmem_limit_bytes=48 * MiB)  # <= 48 MiB so the config also fits v7x (64 MiB/TC)

    if bias is None:
        return pl.pallas_call(
            _matmul_kernel,
            out_shape=jax.ShapeDtypeStruct((M, Nout), out_dtype),
            grid=grid,
            in_specs=[x_spec, w_spec],
            out_specs=o_spec,
            scratch_shapes=scratch,
            compiler_params=cp,
        )(xb, wb)

    b_spec = pl.BlockSpec((1, tn), lambda i, j, k: (0, j))
    return pl.pallas_call(
        _matmul_bias_kernel,
        out_shape=jax.ShapeDtypeStruct((M, Nout), out_dtype),
        grid=grid,
        in_specs=[x_spec, w_spec, b_spec],
        out_specs=o_spec,
        scratch_shapes=scratch,
        compiler_params=cp,
    )(xb, wb, bias.astype(jnp.float32).reshape(1, Nout))


# ------------------------- standalone RoPE pass (Q & K) ----------------------
def _rope_kernel(x_ref, cos_ref, sin_ref, o_ref):
    hd = x_ref.shape[-1]
    x = x_ref[0].astype(jnp.float32)                 # (tr, hd), [even | odd]
    c = cos_ref[...].astype(jnp.float32)
    s = sin_ref[...].astype(jnp.float32)
    # x*[c|c] + roll(x, hd/2)*[-s|s]  (per-head lane roll via XLU)
    rot = x * c + pltpu.roll(x, shift=hd // 2, axis=1) * s
    o_ref[0] = rot.astype(o_ref.dtype)


def rope_qk(qkv, cos2, sin2, B, N, H, hd):
    """Rotates the Q and K heads of the (B, N, 3C) qkv activation once, into a
    head-contiguous (2*B*H, N, hd) tensor ([all q heads | all k heads])."""
    BH = B * H
    tr = _pick_tile(N, 512)
    grid = (2, BH, N // tr)
    in_specs = [
        pl.BlockSpec((1, tr, hd),
                     lambda s, bh, t: (bh // H, t, s * H + bh % H)),
        pl.BlockSpec((tr, hd), lambda s, bh, t: (t, 0)),
        pl.BlockSpec((tr, hd), lambda s, bh, t: (t, 0)),
    ]
    out_spec = pl.BlockSpec((1, tr, hd), lambda s, bh, t: (s * BH + bh, t, 0))
    return pl.pallas_call(
        _rope_kernel,
        out_shape=jax.ShapeDtypeStruct((2 * BH, N, hd), qkv.dtype),
        grid=grid,
        in_specs=in_specs,
        out_specs=out_spec,
        compiler_params=pltpu.CompilerParams(
            dimension_semantics=("parallel", "parallel", "arbitrary")),
    )(qkv, cos2, sin2)


# --------------------------- flash attention kernel --------------------------
def _flash_attn_kernel(q_ref, k_ref, v_ref, o_ref, m_scr, l_scr, acc_scr, *,
                       causal):
    qi = pl.program_id(1)
    ki = pl.program_id(2)
    tq = q_ref.shape[-2]
    tk = k_ref.shape[-2]

    # NOTE: MASK_VALUE init (not -inf) plus tile skipping is safe only because
    # the kv loop always starts at ki == 0 and column 0 is never masked for any
    # query row (causal) / nothing is masked (non-causal).
    @pl.when(ki == 0)
    def _init():
        m_scr[...] = jnp.full(m_scr.shape, MASK_VALUE, m_scr.dtype)
        l_scr[...] = jnp.zeros_like(l_scr)
        acc_scr[...] = jnp.zeros_like(acc_scr)

    def _body(with_mask):
        q = q_ref[0]                      # (tq, hd) bf16, rotated + pre-scaled
        k = k_ref[0]                      # (tk, hd) bf16, rotated
        # Single NT matmul contracting the full head_dim (no materialized .T).
        s = lax.dot_general(q, k, (((1,), (1,)), ((), ())),
                            preferred_element_type=jnp.float32)     # (tq, tk)
        if with_mask:
            row = qi * tq + lax.broadcasted_iota(jnp.int32, s.shape, 0)
            col = ki * tk + lax.broadcasted_iota(jnp.int32, s.shape, 1)
            s = jnp.where(col <= row, s, MASK_VALUE)

        m_prev = m_scr[...]
        m_new = jnp.maximum(m_prev, jnp.max(s, axis=-1, keepdims=True))
        alpha = jnp.exp(m_prev - m_new)
        p = jnp.exp(s - m_new)
        l_scr[...] = alpha * l_scr[...] + jnp.sum(p, axis=-1, keepdims=True)
        acc_scr[...] = alpha * acc_scr[...] + jnp.dot(
            p.astype(v_ref.dtype), v_ref[0], preferred_element_type=jnp.float32)
        m_scr[...] = m_new

    if causal:
        # Tile classes: fully visible (no mask work), diagonal-straddling
        # (masked), fully masked (skipped; its K/V DMA is also elided by the
        # clamped index_map in the wrapper).
        fully_visible = ki * tk + (tk - 1) <= qi * tq
        straddles = jnp.logical_and(ki * tk <= qi * tq + (tq - 1),
                                    jnp.logical_not(fully_visible))

        @pl.when(fully_visible)
        def _():
            _body(False)

        @pl.when(straddles)
        def _():
            _body(True)
    else:
        _body(False)

    @pl.when(ki == pl.num_programs(2) - 1)
    def _finalize():
        inv_l = pl.reciprocal(l_scr[...], approx=True)   # EUP slot, ~free
        o_ref[0] = (acc_scr[...] * inv_l).astype(o_ref.dtype)


def flash_attention(qk_rot, v_src, *, B, N, H, hd, causal, fast_path, tq, tk):
    BH = B * H
    C = H * hd
    grid = (BH, N // tq, N // tk)

    if causal:
        # Clamp skipped kv tiles to the last valid one: the already-resident
        # block is reused and no DMA is issued for fully-masked tiles.
        def kv_block(qi, ki):
            return jnp.minimum(ki, (qi * tq + tq - 1) // tk)
    else:
        def kv_block(qi, ki):
            return ki

    # TODO(synk): consider pipeline_mode=pl.Buffered(3) on K/V specs to cover
    # the strided per-head V DMA on the fast path.
    q_spec = pl.BlockSpec((1, tq, hd), lambda bh, qi, ki: (bh, qi, 0))
    k_spec = pl.BlockSpec((1, tk, hd),
                          lambda bh, qi, ki: (BH + bh, kv_block(qi, ki), 0))
    if fast_path:
        # V tiles read straight out of (B, N, 3C); context written straight
        # into (B, N, C) -> no HBM relayouts around the kernel.
        v_spec = pl.BlockSpec(
            (1, tk, hd),
            lambda bh, qi, ki: (bh // H, kv_block(qi, ki), 2 * H + bh % H))
        o_spec = pl.BlockSpec((1, tq, hd),
                              lambda bh, qi, ki: (bh // H, qi, bh % H))
        out_shape = jax.ShapeDtypeStruct((B, N, C), qk_rot.dtype)
    else:
        v_spec = pl.BlockSpec((1, tk, hd),
                              lambda bh, qi, ki: (bh, kv_block(qi, ki), 0))
        o_spec = pl.BlockSpec((1, tq, hd), lambda bh, qi, ki: (bh, qi, 0))
        out_shape = jax.ShapeDtypeStruct((BH, N, hd), qk_rot.dtype)

    return pl.pallas_call(
        functools.partial(_flash_attn_kernel, causal=causal),
        out_shape=out_shape,
        grid=grid,
        in_specs=[q_spec, k_spec, v_spec],
        out_specs=o_spec,
        scratch_shapes=[
            pltpu.VMEM((tq, 1), jnp.float32),    # running max m
            pltpu.VMEM((tq, 1), jnp.float32),    # running sum l
            pltpu.VMEM((tq, hd), jnp.float32),   # output accumulator
        ],
        compiler_params=pltpu.CompilerParams(
            # Leading bh axis is load-balanced under causal -> the one to
            # split across v7x's 2 TensorCores.
            dimension_semantics=("parallel", "parallel", "arbitrary"),
            vmem_limit_bytes=32 * MiB),
    )(qk_rot, qk_rot, v_src)


def _qkv_row_permutation(C, H, hd):
    """Permutes nn.Linear(dim, 3*dim) output rows so each q/k head projects
    into [even dims | odd dims] contiguous halves (v untouched)."""
    d = np.arange(hd)
    deint = np.concatenate([d[0::2], d[1::2]])
    head_cols = (np.arange(H)[:, None] * hd + deint[None, :]).reshape(-1)
    return np.concatenate([head_cols, C + head_cols, 2 * C + np.arange(C)])


# ------------------------------ module wrapper --------------------------------
def attention_forward(x, freqs_cos, freqs_sin, w_qkv, w_proj, b_proj,
                      num_heads, causal=False):
    """Equivalent of Attention.forward(x, freqs_cis, causal=causal, attn_mask=None)."""
    B, N, C = x.shape
    H = num_heads
    hd = C // H
    scale = float(hd) ** -0.5

    # One-time weight prep (done at weight-load time in practice):
    #  - fold the softmax scale into the Q rows (RoPE is linear -> commutes),
    #  - permute q/k head rows into [even | odd] halves.
    row_scale = jnp.concatenate([jnp.full((C,), scale, jnp.float32),
                                 jnp.ones((2 * C,), jnp.float32)])
    perm = _qkv_row_permutation(C, H, hd)
    w_qkv_p = (w_qkv.astype(jnp.float32) * row_scale[:, None])[perm, :]

    # ---- QKV projection (no bias: qkv_bias=False); bf16 output -> half HBM ----
    qkv = pallas_linear(x.reshape(B * N, C), jnp.transpose(w_qkv_p),
                        out_dtype=jnp.bfloat16)
    qkv = qkv.reshape(B, N, 3 * C)                       # free reshape

    # Rotary tables duplicated over halves, stored bf16 (half the table DMA).
    cos2 = jnp.concatenate([freqs_cos, freqs_cos], axis=-1).astype(jnp.bfloat16)
    sin2 = jnp.concatenate([-freqs_sin, freqs_sin], axis=-1).astype(jnp.bfloat16)

    tq = _pick_tile(N, 128 if _is_v5e() else 256)   # smaller q tile on v5e
    tk = _pick_tile(N, 256)

    fast_path = (hd % 128 == 0)
    if fast_path:
        # Rotate Q/K once (standalone pass), keep V in the qkv activation.
        qk_rot = rope_qk(qkv, cos2, sin2, B, N, H, hd)
        v_src = qkv
    else:
        # TODO(synk): zero-pad head_dim to 128 to keep the lane-dense fast path
        # instead of this XLA relayout fallback.
        qkv5 = qkv.reshape(B, N, 3, H, hd).transpose(2, 0, 3, 1, 4)
        xq = qkv5[0].reshape(B * H, N, hd).astype(jnp.float32)
        xk = qkv5[1].reshape(B * H, N, hd).astype(jnp.float32)
        v_src = qkv5[2].reshape(B * H, N, hd)
        c = cos2.astype(jnp.float32)[None]
        s = sin2.astype(jnp.float32)[None]
        q_rot = xq * c + jnp.roll(xq, hd // 2, axis=-1) * s
        k_rot = xk * c + jnp.roll(xk, hd // 2, axis=-1) * s
        qk_rot = jnp.concatenate([q_rot, k_rot], axis=0).astype(jnp.bfloat16)

    attn = flash_attention(qk_rot, v_src, B=B, N=N, H=H, hd=hd, causal=causal,
                           fast_path=fast_path, tq=tq, tk=tk)

    if fast_path:
        ctx = attn.reshape(B * N, C)
    else:
        ctx = attn.reshape(B, H, N, hd).transpose(0, 2, 1, 3).reshape(B * N, C)

    # ---- output projection (with bias), back to the input dtype ----
    out = pallas_linear(ctx, jnp.transpose(w_proj), b_proj, out_dtype=x.dtype)
    return out.reshape(B, N, C)
    # TODO(synk): non-causal key-padding attn_mask path and attn/proj dropout
    # are not implemented (eval-mode / attn_mask=None semantics only).


# ------------------------------- reference ------------------------------------
def reference_forward(x, freqs_cos, freqs_sin, w_qkv, w_proj, b_proj,
                      num_heads, causal=False):
    B, N, C = x.shape
    H = num_heads
    hd = C // H
    scale = np.float32(hd ** (-0.5))

    qkv = x @ w_qkv.T
    qkv = qkv.reshape(B, N, 3, H, hd).transpose(2, 0, 3, 1, 4)
    xq, xk, xv = qkv[0], qkv[1], qkv[2]

    def rope(t):
        tp = t.reshape(B, H, N, hd // 2, 2)
        a0, a1 = tp[..., 0], tp[..., 1]
        c = freqs_cos[None, None]
        s = freqs_sin[None, None]
        return jnp.stack([a0 * c - a1 * s, a0 * s + a1 * c], -1).reshape(B, H, N, hd)

    q, k = rope(xq), rope(xk)
    scores = jnp.einsum("bhqd,bhkd->bhqk", q, k) * scale
    if causal:
        mask = jnp.tril(jnp.ones((N, N), bool))
        scores = jnp.where(mask[None, None], scores, -jnp.inf)
    p = jax.nn.softmax(scores, axis=-1)
    ctx = jnp.einsum("bhqk,bhkd->bhqd", p, xv)
    ctx = ctx.transpose(0, 2, 1, 3).reshape(B, N, C)
    return ctx @ w_proj.T + b_proj


# --------------------------------- main ----------------------------------------
if __name__ == "__main__":
    # Small, but with a lane-aligned head_dim (128) and 2 q/kv tiles so flash
    # accumulation, causal tile-skipping, DMA clamping and the straddle-only
    # mask path are all exercised.
    B, N, C, H = 2, 512, 256, 2
    hd = C // H

    key = jax.random.PRNGKey(0)
    kx, kq, kp, kb = jax.random.split(key, 4)
    x = jax.random.normal(kx, (B, N, C), jnp.float32)
    w_qkv = 0.02 * jax.random.normal(kq, (3 * C, C), jnp.float32)   # nn.Linear(dim, 3*dim)
    w_proj = 0.02 * jax.random.normal(kp, (C, C), jnp.float32)      # nn.Linear(dim, dim)
    b_proj = 0.02 * jax.random.normal(kb, (C,), jnp.float32)

    # llama-style freqs_cis for head_dim, max_len (real representation)
    theta = 10000.0
    inv_freq = 1.0 / (theta ** (jnp.arange(0, hd, 2, dtype=jnp.float32) / hd))
    angles = jnp.arange(N, dtype=jnp.float32)[:, None] * inv_freq[None, :]   # (N, hd/2)
    freqs_cos = jnp.cos(angles)
    freqs_sin = jnp.sin(angles)

    for causal in (False, True):
        out = attention_forward(x, freqs_cos, freqs_sin, w_qkv, w_proj, b_proj,
                                num_heads=H, causal=causal)
        out = jax.block_until_ready(out)
        ref = reference_forward(x, freqs_cos, freqs_sin, w_qkv, w_proj, b_proj,
                                num_heads=H, causal=causal)
        assert out.shape == (B, N, C)
        # bf16 MXU operands -> looser tolerance vs the f32 reference.
        np.testing.assert_allclose(np.asarray(out), np.asarray(ref),
                                   atol=2e-2, rtol=2e-2)
    print("KERNEL_OK")
</pallas_src>

<mosaic_0001>
module attributes {stable_mosaic.version = 11 : i64} {
  func.func @_matmul_kernel(%arg0: i32, %arg1: i32, %arg2: i32, %arg3: memref<512x256xbf16, #tpu.memory_space<vmem>>, %arg4: memref<256x384xbf16, #tpu.memory_space<vmem>>, %arg5: memref<512x384xbf16, #tpu.memory_space<vmem>>, %arg6: memref<512x384xf32, #tpu.memory_space<vmem>>) attributes {dimension_semantics = [#tpu.dimension_semantics<parallel>, #tpu.dimension_semantics<parallel>, #tpu.dimension_semantics<arbitrary>], iteration_bounds = array<i64: 2, 2, 1>, scalar_prefetch = 0 : i64, scratch_operands = 1 : i64, tpu.core_type = #tpu.core_type<tc>, window_params = [{transform_indices = @transform_0, window_bounds = array<i64: 512, 256>}, {transform_indices = @transform_1, window_bounds = array<i64: 256, 384>}, {transform_indices = @transform_2, window_bounds = array<i64: 512, 384>}]} {
    %c0_i32 = arith.constant 0 : i32
    %0 = arith.cmpi eq, %arg2, %c0_i32 : i32
    %1 = arith.extui %0 : i1 to i32
    %c0_i32_0 = arith.constant 0 : i32
    %2 = arith.cmpi ne, %1, %c0_i32_0 : i32
    scf.if %2 {
      %cst_10 = arith.constant 0.000000e+00 : f32
      %12 = vector.broadcast %cst_10 : f32 to vector<512x384xf32>
      %c0_11 = arith.constant 0 : index
      %c0_12 = arith.constant 0 : index
      %13 = vector.load %arg6[%c0_11, %c0_12] : memref<512x384xf32, #tpu.memory_space<vmem>>, vector<512x384xf32>
      tpu.vector_store %arg6[%c0_11, %c0_12], %12 {strides = array<i32>} : memref<512x384xf32, #tpu.memory_space<vmem>>, vector<512x384xf32>,
    } else {
    }
    %c0 = arith.constant 0 : index
    %c0_1 = arith.constant 0 : index
    %3 = vector.load %arg6[%c0, %c0_1] : memref<512x384xf32, #tpu.memory_space<vmem>>, vector<512x384xf32>
    %c0_2 = arith.constant 0 : index
    %c0_3 = arith.constant 0 : index
    %4 = vector.load %arg3[%c0_2, %c0_3] : memref<512x256xbf16, #tpu.memory_space<vmem>>, vector<512x256xbf16>
    %c0_4 = arith.constant 0 : index
    %c0_5 = arith.constant 0 : index
    %5 = vector.load %arg4[%c0_4, %c0_5] : memref<256x384xbf16, #tpu.memory_space<vmem>>, vector<256x384xbf16>
    %cst = arith.constant dense<0.000000e+00> : vector<512x384xf32>
    %6 = tpu.matmul %4, %5, %cst {dimension_numbers = #tpu.dot_dimension_numbers<[1], [0], [0], [1], [0, 0, 1, 1], [], []>} : vector<512x256xbf16>, vector<256x384xbf16>, vector<512x384xf32> -> vector<512x384xf32>
    %7 = arith.addf %3, %6 : vector<512x384xf32>
    %c0_6 = arith.constant 0 : index
    %c0_7 = arith.constant 0 : index
    %8 = vector.load %arg6[%c0_6, %c0_7] : memref<512x384xf32, #tpu.memory_space<vmem>>, vector<512x384xf32>
    tpu.vector_store %arg6[%c0_6, %c0_7], %7 {strides = array<i32>} : memref<512x384xf32, #tpu.memory_space<vmem>>, vector<512x384xf32>,
    %c0_i32_8 = arith.constant 0 : i32
    %9 = arith.cmpi eq, %arg2, %c0_i32_8 : i32
    %10 = arith.extui %9 : i1 to i32
    %c0_i32_9 = arith.constant 0 : i32
    %11 = arith.cmpi ne, %10, %c0_i32_9 : i32
    scf.if %11 {
      %c0_10 = arith.constant 0 : index
      %c0_11 = arith.constant 0 : index
      %12 = vector.load %arg6[%c0_10, %c0_11] : memref<512x384xf32, #tpu.memory_space<vmem>>, vector<512x384xf32>
      %13 = arith.truncf %12 : vector<512x384xf32> to vector<512x384xbf16>
      %c0_12 = arith.constant 0 : index
      %c0_13 = arith.constant 0 : index
      %14 = vector.load %arg5[%c0_12, %c0_13] : memref<512x384xbf16, #tpu.memory_space<vmem>>, vector<512x384xbf16>
      tpu.vector_store %arg5[%c0_12, %c0_13], %13 {strides = array<i32>} : memref<512x384xbf16, #tpu.memory_space<vmem>>, vector<512x384xbf16>,
    } else {
    }
    return
  }
  func.func @transform_0(%arg0: i32, %arg1: i32, %arg2: i32) -> (i32, i32) {
    %c0_i32 = arith.constant 0 : i32
    return %arg0, %arg2 : i32, i32
  }
  func.func @transform_1(%arg0: i32, %arg1: i32, %arg2: i32) -> (i32, i32) {
    %c0_i32 = arith.constant 0 : i32
    return %arg2, %arg1 : i32, i32
  }
  func.func @transform_2(%arg0: i32, %arg1: i32, %arg2: i32) -> (i32, i32) {
    %c0_i32 = arith.constant 0 : i32
    return %arg0, %arg1 : i32, i32
  }
}

</mosaic_0001>

<bundles_post_ra>
// kernel: tpu_custom_call.1
= control target key start
LH: loop header
LB: loop body
LE: loop exit
PB: predicated region body
PF: predicated region fallthrough
CT: control target
= control target key end

     0   :  { %s4931_s0 = inlined_call_operand.hbm [shape: bf16[1024,256], index: 0, kind: input, shape index: {}]   ;;  %s4932_s1 = inlined_call_operand.hbm [shape: bf16[256,768], index: 1, kind: input, shape index: {}]   ;;  %s4933_s2 = inlined_call_operand.hbm [shape: bf16[1024,768], index: 2, kind: output, shape index: {}]  }
   0x1   :  { %4939 = sst [smem:[#allocation18_spill]] %s4931_s0 }
   0x2   :  { %4940 = sst [smem:[#allocation19_spill]] %s4933_s2 }
   0x3   :  { %7 = vsyncpa [#allocation4], 0 }
   0x4   :  { %9 = vsyncpa [#allocation4 + $0x1], 0 }
   0x5   :  { %10 = vsyncpa [#allocation7], 0 }
   0x6   :  { %12 = vsyncpa [#allocation7 + $0x1], 0 }
   0x7   :  { %13 = vsyncpa [#allocation5], 0 }
   0x8   :  { %15 = vsyncpa [#allocation5 + $0x1], 0  ;;  %s4381_s9 = smov 0   ;;  %s4383_s10 = smov 0  }
   0x9   :  { %s4385_s11 = smov 0   ;;  %s4387_s12 = smov 0  }
   0xa   :  { %s4389_s13 = smov 0   ;;  %s4391_s14 = smov 0  }
   0xb   :  { %s4393_s15 = smov 0   ;;  %s4395_s16 = smov 0  }
   0xc   :  { %s4397_s17 = smov 0   ;;  %s4399_s18 = smov 0  }
   0xd   :  { %s4401_s19 = smov 0   ;;  %s4403_s20 = smov 0  }
   0xe   :  { %s4405_s21 = smov 0   ;;  %s4407_s22 = smov 0  }
   0xf LB: > { %4941 = sst [smem:[#allocation12_spill]] %s4340_s19  ;;  %s3457_s23 = sadd.s32 4294967295, %s4352_s22   ;;  %s4352_s22 = sphi %s4407_s22, %s21_s22   ;;  %s4348_s21 = sphi %s4405_s21, %s4978_s21   ;;  %s4344_s20 = sphi %s4403_s20, %s4966_s20   ;;  %s4340_s19 = sphi %s4401_s19, %s4965_s19   ;;  %s4336_s18 = sphi %s4399_s18, %s4964_s18   ;;  %s4332_s17 = sphi %s4397_s17, %s4977_s17   ;;  %s4328_s16 = sphi %s4395_s16, %s4976_s16   ;;  %s4324_s15 = sphi %s4393_s15, %s4975_s15   ;;  %s4320_s14 = sphi %s4391_s14, %s4974_s14   ;;  %s4316_s13 = sphi %s4389_s13, %s4973_s13   ;;  %s4312_s12 = sphi %s4387_s12, %s4972_s12   ;;  %s4308_s11 = sphi %s4385_s11, %s4971_s11   ;;  %s4304_s10 = sphi %s4383_s10, %s4970_s10   ;;  %s4300_s9 = sphi %s4381_s9, %s4969_s9  }
  0x10   : > { %4942 = sst [smem:[#allocation13_spill]] %s4344_s20  ;;  %p56_p0 = scmp.ne.s32.totalorder %s4332_s17, %s4328_s16 }
  0x11   : > { %4943 = sst [smem:[#allocation14_spill]] %s4348_s21  ;;  %p57_p1 = scmp.eq.s32.totalorder %s4352_s22, 0 }
  0x12   : > { %p62_p2 = scmp.ne.s32.totalorder %s4328_s16, %s4324_s15  ;;  %p4456_p3 = scmp.eq.s32.totalorder %s3457_s23, 0 }
  0x13   : > { %p4460_p4 = scmp.eq.s32.totalorder %s3457_s23, 3  ;;  %p58_p5 = por %p57_p1, %p56_p0 }
  0x14   : > { %p4468_p6 = por %p4456_p3, %p62_p2  ;;  %p3865_p7 = scmp.lt.s32.totalorder %s4352_s22, 4 }
  0x15   : > { %s142_s29 = sand.u32 1, %s4332_s17   ;;  %s3714_s30 = sshll.u32 %s4348_s21, 13 }
  0x16   : > { %s3461_s3 = sshll.u32 %s142_s29, 9  ;;  %s4947_s0 = sld [smem:[#allocation18_spill]] }
  0x17   : > { %s146_s7 = scalar_lea.vmem [#allocation3], %s3461_s3  ;;  %p4480_p8 = pnand %p3865_p7, %p58_p5 }
  0x18   : > { %s156_s8 = sshll.u32 %s146_s7, 4  ;;  %s143_s23 = scalar_lea.sflag [#allocation4], %s142_s29  ;;  %s157_s8 = int_to_ptr.vmem [resolvable:$true] %s156_s8 }
  0x19   : > { %p4150_p9 = pneg %p4480_p8  ;;  %s4161_s25 = scalar_lea.vmem %s157_s8, 8192 }
  0x1a   : > { %p4162_p10 = scmp.ne.s32.totalorder %s157_s8, %s4161_s25  ;;  %s4354_s24 = smov [#allocation3]  }
  0x1b   : > { %s4166_s2 = sshll.u32 %s4354_s24, 4  ;;  %s4167_s2 = int_to_ptr.vmem [resolvable:$false] %s4166_s2 }
  0x1c   : > { %s155_s6 = scalar_lea.hbm %s4947_s0, %s3714_s30  ;;  %p4164_p11 = pnand %p4162_p10, %p4150_p9 }
  0x1d   : > { %s4168_s30 = scalar_lea.vmem %s4167_s2, 16384  ;;  %p4169_p13 = scmp.lt.s32.totalorder %s157_s8, %s4167_s2 }
  0x1e   : > { %p4165_p12 = pneg %p4164_p11  ;;  %p4170_p0 = scmp.lt.s32.totalorder %s4168_s30, %s4161_s25 }
  0x20   : > { %p4171_p2 = por %p4170_p0, %p4169_p13 }
  0x22   : > { %p4172_p5 = pnand %p4171_p2, %p4165_p12 }
  0x24   : > { %4175 = shalt.err (!%p4172_p5)
}
  0x25   : > { %s4355_s3 = smov 128   ;;  %s4356_s2 = smov 8  }
  0x26   : > { %3857 = dma.hbm_to_vmem [thread:$0]  (!%p4480_p8), %s155_s6, 8192, %s157_s8, %s143_s23, %s4355_s3, %s4355_s3, %s4356_s2  }
  0x27   : > { %p3466_p9 = scmp.ge.s32.totalorder %s4352_s22, 1  ;;  %p188_p10 = scmp.lt.s32.totalorder %s4352_s22, 5 }
  0x28   : > { %s3458_s25 = sadd.s32 4294967294, %s4352_s22   ;;  %s36_s29 = sadd.s32 1, %s4344_s20 }
  0x29   : > { %p4490_p11 = pnand %p3466_p9, %p188_p10  ;;  %s77_s4 = sadd.s32 1, %s4320_s14 }
  0x2a   : > { %p38_p12 = scmp.ge.s32.totalorder %s36_s29, 2  ;;  %p84_p13 = scmp.ne.s32.totalorder %s4320_s14, %s4316_s13 }
  0x2b   : > { %p90_p0 = scmp.ne.s32.totalorder %s4316_s13, %s4312_s12  ;;  %s105_s5 = sadd.s32 1, %s4308_s11 }
  0x2c   : > { %s4980_s29 = smov (%p38_p12, %s36_s29), 0  ;;  %s4951_s6 = sadd.s32 1, %s4348_s21 }
  0x2d   : > { %4950 = sst [smem:[#allocation15_spill]] %s4980_s29  ;;  %s4982_s6 = smov (!%p38_p12, %s4951_s6), %s4348_s21 }
  0x2e   : > { %s73_s7 = ssub.s32 %s4344_s20, %s4980_s29  ;;  %p4511_p8 = por %p84_p13, %p57_p1 }
  0x2f   : > { %p42_p2 = scmp.ge.s32.totalorder %s4982_s6, 2  ;;  %p75_p5 = scmp.eq.s32.totalorder %s73_s7, 0 }
  0x30   : > { %p4517_p9 = por %p90_p0, %p4456_p3  ;;  %p115_p10 = scmp.ne.s32.totalorder %s4308_s11, %s4304_s10 }
  0x31   : > { %s4984_s6 = smov (%p42_p2, %s4982_s6), 0  ;;  %p121_p13 = scmp.ne.s32.totalorder %s4304_s10, %s4300_s9 }
  0x32   : > { %4954 = sst [smem:[#allocation16_spill]] %s4984_s6  ;;  %s44_s23 = ssub.s32 %s4348_s21, %s4984_s6 }
  0x33   : > { %s4526_s15 = scalar_select %p75_p5, %s4320_s14, %s77_s4  }
  0x34   : > { %p4532_p1 = por %p4460_p4, %p115_p10  ;;  %p47_p12 = scmp.eq.s32.totalorder %s44_s23, 0 }
  0x35   : > { %s102_s26 = sor.u32 %s73_s7, %s44_s23  ;;  %s4956_s3 = sadd.s32 1, %s4332_s17 }
  0x36   : > { %p103_p3 = scmp.eq.s32.totalorder %s102_s26, 0  ;;  %p122_p0 = scmp.eq.s32.totalorder %s3458_s25, 3 }
  0x37   : > { %s4541_s2 = scalar_select %p47_p12, %s4332_s17, %s4956_s3  }
  0x38   : > { %s4544_s0 = scalar_select %p103_p3, %s4308_s11, %s105_s5  }
  0x39   : > { %4957 = sst [smem:[#allocation17_spill]] %s4541_s2  ;;  %s166_s29 = sand.u32 1, %s4320_s14  }
  0x3a   : > { %s3844_s19 = smul.u32 384, %s166_s29  ;;  %p4547_p2 = por %p122_p0, %p121_p13 }
  0x3b   : > { %s3715_s27 = smul.u32 192, %s4344_s20  ;;  %p4556_p4 = pnand %p3865_p7, %p4511_p8 }
  0x3c   : > { %s170_s26 = scalar_lea.vmem [#allocation6], %s3844_s19  ;;  %s167_s3 = scalar_lea.sflag [#allocation7], %s166_s29 }
  0x3d   : > { %s179_s5 = scalar_lea.hbm %s4932_s1, %s3715_s27  ;;  %s180_s25 = sshll.u32 %s170_s26, 4  ;;  %s181_s25 = int_to_ptr.vmem [resolvable:$true] %s180_s25 }
  0x3e   : > { %p4178_p5 = pneg %p4556_p4  ;;  %s4189_s21 = scalar_lea.vmem %s181_s25, 6144 }
  0x3f   : > { %p4190_p10 = scmp.ne.s32.totalorder %s181_s25, %s4189_s21  ;;  %s4357_s8 = smov [#allocation6]  }
  0x40   : > { %s4194_s20 = sshll.u32 %s4357_s8, 4  ;;  %s4195_s20 = int_to_ptr.vmem [resolvable:$false] %s4194_s20 }
  0x41   : > { %p4192_p12 = pnand %p4190_p10, %p4178_p5  ;;  %s4196_s2 = scalar_lea.vmem %s4195_s20, 12288 }
  0x42   : > { %p4197_p7 = scmp.lt.s32.totalorder %s181_s25, %s4195_s20  ;;  %p4198_p8 = scmp.lt.s32.totalorder %s4196_s2, %s4189_s21 }
  0x43   : > { %p4193_p3 = pneg %p4192_p12 }
  0x44   : > { %p4199_p13 = por %p4198_p8, %p4197_p7 }
  0x46   : > { %p4200_p0 = pnand %p4199_p13, %p4193_p3 }
  0x48   : > { %4203 = shalt.err (!%p4200_p0)
}
  0x49   : > { %s4358_s27 = smov 384   ;;  %s4359_s19 = smov 192  }
  0x4a   : > { %s4360_s7 = smov 12   ;;  %192 = sbr.rel (%p4490_p11) target bundleno = 614 (0x266), region = 28 }
  0x4b   : > { %3860 = dma.hbm_to_vmem [thread:$0]  (!%p4556_p4), %s179_s5, 6144, %s181_s25, %s167_s3, %s4358_s27, %s4359_s19, %s4360_s7  }
  0x4c   : > { %s194_s29 = sand.u32 (!%p4490_p11), 1, %s4328_s16  }
  0x4d   : > { %s3467_s23 = sshll.u32 (!%p4490_p11), %s194_s29, 9  ;;  %s195_s26 = scalar_lea.sflag (!%p4490_p11), [#allocation4], %s194_s29 }
  0x4e   : > { %s4570_s8 = scalar_lea.vmem (!%p4490_p11), [#allocation3], %s3467_s23 }
  0x4f   : > { %4287 = dma.done.wait (%p4468_p6), %s195_s26, 8192  }
  0x50   : > { %4289 = vsyncadd (%p4468_p6), %s195_s26, 4294959104  ;;  %s203_s20 = sand.u32 1, %s4316_s13  }
  0x51   : > { %s3845_s21 = smul.u32 384, %s203_s20  ;;  %s204_s6 = scalar_lea.sflag [#allocation7], %s203_s20 }
  0x53   : > { %s4577_s2 = scalar_lea.vmem [#allocation6], %s3845_s21 }
  0x54   : > { %4291 = dma.done.wait (%p4517_p9), %s204_s6, 6144  }
  0x55   : > { %4293 = vsyncadd (%p4517_p9), %s204_s6, 4294961152  ;;  %v4361_v0 = vmov 0   ;;  %v3988_v1 = vld [vmem:[%s4577_s2 + $0xac] ss:$12 sps:$4 sm:$0xff]   ;;  %v3990_v2 = vld [vmem:[%s4577_s2 + $0xb0] ss:$12 sps:$4 sm:$0xff]  }
  0x56   : > { %1685 = vmatprep.subr.bf16.mxu1 %v4361_v0  ;;  %1332 = vmatprep.subr.bf16.mxu0 %v3988_v1  ;;  %v3991_v3 = vld [vmem:[%s4577_s2 + $0xa8] ss:$12 sps:$4 sm:$0xff]   ;;  %v3994_v5 = vld [vmem:[%s4577_s2 + $0x98] ss:$12 sps:$4 sm:$0xff]   ;;  %v3995_v6 = vld [vmem:[%s4577_s2 + $0x90] ss:$12 sps:$4 sm:$0xff]  }
  0x57   : > { %1686 = vmatpush1.bf16.msra.mxu1 %v3990_v2  ;;  %v3992_v4 = vld [vmem:[%s4577_s2 + $0x94] ss:$12 sps:$4 sm:$0xff]   ;;  %1333 = vmatpush1.bf16.msra.mxu0 %v3991_v3  ;;  %v3996_v7 = vld [vmem:[%s4577_s2 + $0x7c] ss:$12 sps:$4 sm:$0xff]   ;;  %v3999_v9 = vld [vmem:[%s4577_s2 + $0x78] ss:$12 sps:$4 sm:$0xff]  }
  0x58   : > { %1687 = vmatprep.subr.bf16.mxu1 %v4361_v0  ;;  %1334 = vmatprep.subr.bf16.mxu0 %v3992_v4  ;;  %v3998_v8 = vld [vmem:[%s4577_s2 + $0x80] ss:$12 sps:$4 sm:$0xff]   ;;  %v4000_v10 = vld [vmem:[%s4577_s2 + $0x64] ss:$12 sps:$4 sm:$0xff]   ;;  %v4002_v11 = vld [vmem:[%s4577_s2 + $0x68] ss:$12 sps:$4 sm:$0xff]  }
  0x59   : > { %v4003_v12 = vld [vmem:[%s4577_s2 + $0x60] ss:$12 sps:$4 sm:$0xff]   ;;  %v4006_v14 = vld [vmem:[%s4577_s2 + $0x50] ss:$12 sps:$4 sm:$0xff]   ;;  %v4007_v15 = vld [vmem:[%s4577_s2 + $0x48] ss:$12 sps:$4 sm:$0xff]  }
  0x5a   : > { %v4004_v13 = vld [vmem:[%s4577_s2 + $0x4c] ss:$12 sps:$4 sm:$0xff]   ;;  %v4008_v16 = vld [vmem:[%s4577_s2 + $0x34] ss:$12 sps:$4 sm:$0xff]   ;;  %v4011_v18 = vld [vmem:[%s4577_s2 + $0x30] ss:$12 sps:$4 sm:$0xff]  }
  0x5b   : > { %1688 = vmatpush1.bf16.msra.mxu1 %v3994_v5  ;;  %1335 = vmatpush1.bf16.msra.mxu0 %v3995_v6  ;;  %v4010_v17 = vld [vmem:[%s4577_s2 + $0x38] ss:$12 sps:$4 sm:$0xff]   ;;  %v4012_v19 = vld [vmem:[%s4577_s2 + $0x1c] ss:$12 sps:$4 sm:$0xff]   ;;  %v4014_v20 = vld [vmem:[%s4577_s2 + $0x20] ss:$12 sps:$4 sm:$0xff]  }
  0x5c   : > { %1689 = vmatprep.subr.bf16.mxu1 %v4361_v0  ;;  %1336 = vmatprep.subr.bf16.mxu0 %v3996_v7  ;;  %v4015_v21 = vld [vmem:[%s4577_s2 + $0x18] ss:$12 sps:$4 sm:$0xff]   ;;  %v4018_v23 = vld [vmem:[%s4577_s2 + $0x8] ss:$12 sps:$4 sm:$0xff]   ;;  %v4019_v24 = vld [vmem:[%s4577_s2] ss:$12 sps:$4 sm:$0xff]  }
  0x5d   : > { %v4016_v22 = vld [vmem:[%s4577_s2 + $0x4] ss:$12 sps:$4 sm:$0xff]   ;;  %v4020_v25 = vld [vmem:[%s4577_s2 + $0x16c] ss:$12 sps:$4 sm:$0xff]   ;;  %v4023_v27 = vld [vmem:[%s4577_s2 + $0x168] ss:$12 sps:$4 sm:$0xff]  }
  0x5e   : > { %v4022_v26 = vld [vmem:[%s4577_s2 + $0x170] ss:$12 sps:$4 sm:$0xff]   ;;  %v4024_v28 = vld [vmem:[%s4577_s2 + $0x154] ss:$12 sps:$4 sm:$0xff]   ;;  %v4026_v29 = vld [vmem:[%s4577_s2 + $0x158] ss:$12 sps:$4 sm:$0xff]  }
  0x5f   : > { %1690 = vmatpush1.bf16.msra.mxu1 %v3998_v8  ;;  %1337 = vmatpush1.bf16.msra.mxu0 %v3999_v9  ;;  %v4027_v30 = vld [vmem:[%s4577_s2 + $0x150] ss:$12 sps:$4 sm:$0xff]   ;;  %v4054_v32 = vld [vmem:[%s4570_s8 + $0x4] ss:$8 sps:$4 sm:$0xff]   ;;  %v4034_v36 = vld [vmem:[%s4577_s2 + $0x128] ss:$12 sps:$4 sm:$0xff]  }
  0x60   : > { %1691 = vmatprep.subr.bf16.mxu1 %v4361_v0  ;;  %1338 = vmatprep.subr.bf16.mxu0 %v4000_v10  ;;  %v4028_v31 = vld [vmem:[%s4577_s2 + $0x13c] ss:$12 sps:$4 sm:$0xff]   ;;  %v4030_v33 = vld [vmem:[%s4577_s2 + $0x140] ss:$12 sps:$4 sm:$0xff]   ;;  %v4031_v34 = vld [vmem:[%s4577_s2 + $0x138] ss:$12 sps:$4 sm:$0xff]  }
  0x61   : > { %v4032_v35 = vld [vmem:[%s4577_s2 + $0x124] ss:$12 sps:$4 sm:$0xff]   ;;  %1717 = vmatprep.mubr.bf16.mxu1 %v4054_v32  ;;  %1364 = vmatprep.mubr.bf16.mxu0 %v4054_v32  ;;  %v4035_v37 = vld [vmem:[%s4577_s2 + $0x120] ss:$12 sps:$4 sm:$0xff]   ;;  %v4039_v40 = vld [vmem:[%s4577_s2 + $0x108] ss:$12 sps:$4 sm:$0xff]  }
  0x62   : > { %v4036_v38 = vld [vmem:[%s4577_s2 + $0x10c] ss:$12 sps:$4 sm:$0xff]   ;;  %v4038_v39 = vld [vmem:[%s4577_s2 + $0x110] ss:$12 sps:$4 sm:$0xff]   ;;  %v4040_v41 = vld [vmem:[%s4577_s2 + $0xf4] ss:$12 sps:$4 sm:$0xff]  }
  0x63   : > { %1692 = vmatpush1.bf16.msra.mxu1 %v4002_v11  ;;  %1339 = vmatpush1.bf16.msra.mxu0 %v4003_v12  ;;  %v4042_v42 = vld [vmem:[%s4577_s2 + $0xf8] ss:$12 sps:$4 sm:$0xff]   ;;  %v4043_v43 = vld [vmem:[%s4577_s2 + $0xf0] ss:$12 sps:$4 sm:$0xff]   ;;  %v4046_v45 = vld [vmem:[%s4577_s2 + $0xe0] ss:$12 sps:$4 sm:$0xff]  }
  0x64   : > { %1693 = vmatprep.subr.bf16.mxu1 %v4361_v0  ;;  %1340 = vmatprep.subr.bf16.mxu0 %v4004_v13  ;;  %v4044_v44 = vld [vmem:[%s4577_s2 + $0xdc] ss:$12 sps:$4 sm:$0xff]   ;;  %v4047_v46 = vld [vmem:[%s4577_s2 + $0xd8] ss:$12 sps:$4 sm:$0xff]   ;;  %v4051_v49 = vld [vmem:[%s4577_s2 + $0xc0] ss:$12 sps:$4 sm:$0xff]  }
  0x65   : > { %v4048_v47 = vld [vmem:[%s4577_s2 + $0xc4] ss:$12 sps:$4 sm:$0xff]   ;;  %v4050_v48 = vld [vmem:[%s4577_s2 + $0xc8] ss:$12 sps:$4 sm:$0xff]   ;;  %s230_s28 = sand.u32 1, %s4304_s10   ;;  %s4960_s5 = sld [smem:[#allocation12_spill]] }
  0x66   : > { %v4052_v50 = vld [vmem:[%s4570_s8] ss:$8 sps:$4 sm:$0xff]   ;;  %v4055_v51 = vld [vmem:[%s4570_s8 + $0x14] ss:$8 sps:$4 sm:$0xff]   ;;  %v4057_v52 = vld [vmem:[%s4570_s8 + $0x10] ss:$8 sps:$4 sm:$0xff]  }
  0x67   : > { %1694 = vmatpush1.bf16.msra.mxu1 %v4006_v14  ;;  %1341 = vmatpush1.bf16.msra.mxu0 %v4007_v15  ;;  %v4058_v53 = vld [vmem:[%s4570_s8 + $0x24] ss:$8 sps:$4 sm:$0xff]   ;;  %v4060_v54 = vld [vmem:[%s4570_s8 + $0x20] ss:$8 sps:$4 sm:$0xff]   ;;  %v4061_v55 = vld [vmem:[%s4570_s8 + $0x34] ss:$8 sps:$4 sm:$0xff]  }
  0x68   : > { %1695 = vmatprep.subr.bf16.mxu1 %v4361_v0  ;;  %1342 = vmatprep.subr.bf16.mxu0 %v4008_v16  ;;  %v4063_v56 = vld [vmem:[%s4570_s8 + $0x30] ss:$8 sps:$4 sm:$0xff]   ;;  %v4064_v57 = vld [vmem:[%s4570_s8 + $0x44] ss:$8 sps:$4 sm:$0xff]   ;;  %v4066_v58 = vld [vmem:[%s4570_s8 + $0x40] ss:$8 sps:$4 sm:$0xff]  }
  0x69   : > { %v4067_v59 = vld [vmem:[%s4570_s8 + $0x54] ss:$8 sps:$4 sm:$0xff]   ;;  %v4069_v60 = vld [vmem:[%s4570_s8 + $0x50] ss:$8 sps:$4 sm:$0xff]   ;;  %v4070_v61 = vld [vmem:[%s4570_s8 + $0x64] ss:$8 sps:$4 sm:$0xff]  }
  0x6a   : > { %v4072_v62 = vld [vmem:[%s4570_s8 + $0x60] ss:$8 sps:$4 sm:$0xff]   ;;  %v4073_v63 = vld [vmem:[%s4570_s8 + $0x74] ss:$8 sps:$4 sm:$0xff]   ;;  %v4076_v1 = vld [vmem:[%s4570_s8 + $0x84] ss:$8 sps:$4 sm:$0xff]  }
  0x6b   : > { %1696 = vmatpush1.bf16.msra.mxu1 %v4010_v17  ;;  %1343 = vmatpush1.bf16.msra.mxu0 %v4011_v18  ;;  %v4078_v2 = vld [vmem:[%s4570_s8 + $0x80] ss:$8 sps:$4 sm:$0xff]   ;;  %v4079_v3 = vld [vmem:[%s4570_s8 + $0x94] ss:$8 sps:$4 sm:$0xff]   ;;  %v4081_v4 = vld [vmem:[%s4570_s8 + $0x90] ss:$8 sps:$4 sm:$0xff]  }
  0x6c   : > { %1697 = vmatprep.subr.bf16.mxu1 %v4361_v0  ;;  %1344 = vmatprep.subr.bf16.mxu0 %v4012_v19  ;;  %v4082_v5 = vld [vmem:[%s4570_s8 + $0xa4] ss:$8 sps:$4 sm:$0xff]   ;;  %v4084_v6 = vld [vmem:[%s4570_s8 + $0xa0] ss:$8 sps:$4 sm:$0xff]   ;;  %v4085_v7 = vld [vmem:[%s4570_s8 + $0xb4] ss:$8 sps:$4 sm:$0xff]  }
  0x6d   : > { %v4087_v8 = vld [vmem:[%s4570_s8 + $0xb0] ss:$8 sps:$4 sm:$0xff]   ;;  %v4088_v9 = vld [vmem:[%s4570_s8 + $0xc4] ss:$8 sps:$4 sm:$0xff]   ;;  %v4090_v10 = vld [vmem:[%s4570_s8 + $0xc0] ss:$8 sps:$4 sm:$0xff]  }
  0x6e   : > { %v4091_v11 = vld [vmem:[%s4570_s8 + $0xd4] ss:$8 sps:$4 sm:$0xff]   ;;  %v4093_v12 = vld [vmem:[%s4570_s8 + $0xd0] ss:$8 sps:$4 sm:$0xff]   ;;  %v4094_v13 = vld [vmem:[%s4570_s8 + $0xe4] ss:$8 sps:$4 sm:$0xff]  }
  0x6f   : > { %1698 = vmatpush1.bf16.msra.mxu1 %v4014_v20  ;;  %1345 = vmatpush1.bf16.msra.mxu0 %v4015_v21  ;;  %v4096_v14 = vld [vmem:[%s4570_s8 + $0xe0] ss:$8 sps:$4 sm:$0xff]   ;;  %v4097_v15 = vld [vmem:[%s4570_s8 + $0xf4] ss:$8 sps:$4 sm:$0xff]   ;;  %v4099_v16 = vld [vmem:[%s4570_s8 + $0xf0] ss:$8 sps:$4 sm:$0xff]  }
  0x70   : > { %1699 = vmatprep.subr.bf16.mxu1 %v4361_v0  ;;  %1346 = vmatprep.subr.bf16.mxu0 %v4016_v22  ;;  %v4100_v17 = vld [vmem:[%s4570_s8 + $0x104] ss:$8 sps:$4 sm:$0xff]   ;;  %v4102_v18 = vld [vmem:[%s4570_s8 + $0x100] ss:$8 sps:$4 sm:$0xff]   ;;  %v4103_v19 = vld [vmem:[%s4570_s8 + $0x114] ss:$8 sps:$4 sm:$0xff]  }
  0x71   : > { %v4105_v20 = vld [vmem:[%s4570_s8 + $0x110] ss:$8 sps:$4 sm:$0xff]   ;;  %v4106_v21 = vld [vmem:[%s4570_s8 + $0x124] ss:$8 sps:$4 sm:$0xff]   ;;  %v4108_v22 = vld [vmem:[%s4570_s8 + $0x120] ss:$8 sps:$4 sm:$0xff]  }
  0x72   : > { %v4123_v32 = vld [vmem:[%s4570_s8 + $0x170] ss:$8 sps:$4 sm:$0xff]   ;;  %s3846_s24 = smul.u32 768, %s230_s28  ;;  %s4961_s23 = sld [smem:[#allocation19_spill]] }
  0x73   : > { %1700 = vmatpush1.bf16.msra.mxu1 %v4018_v23  ;;  %1347 = vmatpush1.bf16.msra.mxu0 %v4019_v24  ;;  %v4109_v23 = vld [vmem:[%s4570_s8 + $0x134] ss:$8 sps:$4 sm:$0xff]   ;;  %v4111_v24 = vld [vmem:[%s4570_s8 + $0x130] ss:$8 sps:$4 sm:$0xff]   ;;  %s3330_s25 = smul.u32 3, %s4336_s18  ;;  %s4362_s21 = smov [#allocation8]  }
  0x74   : > { %1701 = vmatprep.subr.bf16.mxu1 %v4361_v0  ;;  %1348 = vmatprep.subr.bf16.mxu0 %v4020_v25  ;;  %v4112_v25 = vld [vmem:[%s4570_s8 + $0x144] ss:$8 sps:$4 sm:$0xff]   ;;  %s4701_s12 = scalar_lea.vmem [#allocation8], %s3846_s24  ;;  %s3847_s3 = smul.u32 384, %s4960_s5 }
  0x75   : > { %s3338_s19 = sshll.u32 %s4701_s12, 4  ;;  %s4208_s6 = sshll.u32 %s4362_s21, 4  ;;  %s4851_s19 = int_to_ptr.vmem [resolvable:$true] %s3338_s19  ;;  %s4209_s6 = int_to_ptr.vmem [resolvable:$false] %s4208_s6 }
  0x76   : > { %s3335_s27 = sadd.s32 %s3847_s3, %s3330_s25  ;;  %s4204_s20 = scalar_lea.vmem %s4851_s19, 12288 }
  0x77   : > { %1702 = vmatpush2.bf16.msra.mxu1 %v4022_v26  ;;  %1349 = vmatpush2.bf16.msra.mxu0 %v4023_v27  ;;  %v4114_v26 = vld [vmem:[%s4570_s8 + $0x140] ss:$8 sps:$4 sm:$0xff]   ;;  %v4115_v27 = vld [vmem:[%s4570_s8 + $0x154] ss:$8 sps:$4 sm:$0xff]   ;;  %s3710_s18 = sshll.u32 %s3335_s27, 6  ;;  %p4205_p6 = scmp.ne.s32.totalorder %s4851_s19, %s4204_s20 }
  0x78   : > { %1703 = vmatprep.subr.bf16.mxu1 %v4361_v0  ;;  %1350 = vmatprep.subr.bf16.mxu0 %v4024_v28  ;;  %v4117_v28 = vld [vmem:[%s4570_s8 + $0x150] ss:$8 sps:$4 sm:$0xff]   ;;  %s4848_s26 = scalar_lea.hbm %s4961_s23, %s3710_s18  ;;  %s4210_s2 = scalar_lea.vmem %s4209_s6, 24576 }
  0x79   : > { %p4206_p11 = pnand %p4205_p6, %p4532_p1  ;;  %p4211_p4 = scmp.lt.s32.totalorder %s4851_s19, %s4209_s6 }
  0x7a   : > { %p4212_p5 = scmp.lt.s32.totalorder %s4210_s2, %s4204_s20 }
  0x7b   : > { %1704 = vmatpush2.bf16.msra.mxu1 %v4026_v29  ;;  %1351 = vmatpush2.bf16.msra.mxu0 %v4027_v30  ;;  %v4118_v29 = vld [vmem:[%s4570_s8 + $0x164] ss:$8 sps:$4 sm:$0xff]   ;;  %v4120_v30 = vld [vmem:[%s4570_s8 + $0x160] ss:$8 sps:$4 sm:$0xff]   ;;  %p4207_p9 = pneg %p4206_p11 }
  0x7c   : > { %1705 = vmatprep.subr.bf16.mxu1 %v4361_v0  ;;  %1352 = vmatprep.subr.bf16.mxu0 %v4028_v31  ;;  %v4121_v31 = vld [vmem:[%s4570_s8 + $0x174] ss:$8 sps:$4 sm:$0xff]   ;;  %p4213_p10 = por %p4212_p5, %p4211_p4 }
  0x7e   : > { %p4214_p12 = pnand %p4213_p10, %p4207_p9 }
  0x7f   : > { %1706 = vmatpush2.bf16.msra.mxu1 %v4030_v33  ;;  %1353 = vmatpush2.bf16.msra.mxu0 %v4031_v34  ;;  %v4124_v33 = vld [vmem:[%s4570_s8 + $0x184] ss:$8 sps:$4 sm:$0xff]   ;;  %v4126_v34 = vld [vmem:[%s4570_s8 + $0x180] ss:$8 sps:$4 sm:$0xff]  }
  0x80   : > { %1707 = vmatprep.subr.bf16.mxu1 %v4361_v0  ;;  %1354 = vmatprep.subr.bf16.mxu0 %v4032_v35  ;;  %v4127_v35 = vld [vmem:[%s4570_s8 + $0x194] ss:$8 sps:$4 sm:$0xff]  }
  0x83   : > { %1708 = vmatpush2.bf16.msra.mxu1 %v4034_v36  ;;  %1355 = vmatpush2.bf16.msra.mxu0 %v4035_v37 }
  0x84   : > { %1709 = vmatprep.subr.bf16.mxu1 %v4361_v0  ;;  %1356 = vmatprep.subr.bf16.mxu0 %v4036_v38 }
  0x87   : > { %1710 = vmatpush2.bf16.msra.mxu1 %v4038_v39  ;;  %1357 = vmatpush2.bf16.msra.mxu0 %v4039_v40 }
  0x88   : > { %1711 = vmatprep.subr.bf16.mxu1 %v4361_v0  ;;  %1358 = vmatprep.subr.bf16.mxu0 %v4040_v41 }
  0x8b   : > { %1712 = vmatpush2.bf16.msra.mxu1 %v4042_v42  ;;  %1359 = vmatpush2.bf16.msra.mxu0 %v4043_v43  ;;  %v4129_v43 = vld [vmem:[%s4570_s8 + $0x190] ss:$8 sps:$4 sm:$0xff]  }
  0x8c   : > { %1713 = vmatprep.subr.bf16.mxu1 %v4361_v0  ;;  %1360 = vmatprep.subr.bf16.mxu0 %v4044_v44 }
  0x8f   : > { %1714 = vmatpush2.bf16.msra.mxu1 %v4046_v45  ;;  %1361 = vmatpush2.bf16.msra.mxu0 %v4047_v46  ;;  %v4130_v46 = vld [vmem:[%s4570_s8 + $0x1a4] ss:$8 sps:$4 sm:$0xff]  }
  0x90   : > { %1715 = vmatprep.subr.bf16.mxu1 %v4361_v0  ;;  %1362 = vmatprep.subr.bf16.mxu0 %v4048_v47  ;;  %v4075_v0 = vld [vmem:[%s4570_s8 + $0x70] ss:$8 sps:$4 sm:$0xff]  }
  0x93   : > { %1716 = vmatpush2.bf16.msra.mxu1 %v4050_v48  ;;  %1363 = vmatpush2.bf16.msra.mxu0 %v4051_v49 }
  0x96   : > { %1718 = vmatmul.mubr.bf16.vlgmr.msra.gmra.mxu1 %v4052_v50  ;;  %1365 = vmatmul.mubr.bf16.vlgmr.msra.gmra.mxu0 %v4052_v50 }
  0x97   : > { %1725 = vmatprep.mubr.bf16.mxu1 %v4055_v51  ;;  %1374 = vmatprep.mubr.bf16.mxu0 %v4055_v51 }
  0x9e   : > { %1726 = vmatmul.mubr.bf16.gmra.mxu1 %v4057_v52  ;;  %1375 = vmatmul.mubr.bf16.gmra.mxu0 %v4057_v52 }
  0x9f   : > { %1733 = vmatprep.mubr.bf16.mxu1 %v4058_v53  ;;  %1384 = vmatprep.mubr.bf16.mxu0 %v4058_v53 }
  0xa6   : > { %1734 = vmatmul.mubr.bf16.gmra.mxu1 %v4060_v54  ;;  %1385 = vmatmul.mubr.bf16.gmra.mxu0 %v4060_v54 }
  0xa7   : > { %1741 = vmatprep.mubr.bf16.mxu1 %v4061_v55  ;;  %1394 = vmatprep.mubr.bf16.mxu0 %v4061_v55 }
  0xae   : > { %1742 = vmatmul.mubr.bf16.gmra.mxu1 %v4063_v56  ;;  %1395 = vmatmul.mubr.bf16.gmra.mxu0 %v4063_v56 }
  0xaf   : > { %1749 = vmatprep.mubr.bf16.mxu1 %v4064_v57  ;;  %1404 = vmatprep.mubr.bf16.mxu0 %v4064_v57  ;;  %v4132_v57 = vld [vmem:[%s4570_s8 + $0x1a0] ss:$8 sps:$4 sm:$0xff]  }
  0xb6   : > { %1750 = vmatmul.mubr.bf16.gmra.mxu1 %v4066_v58  ;;  %1405 = vmatmul.mubr.bf16.gmra.mxu0 %v4066_v58 }
  0xb7   : > { %1757 = vmatprep.mubr.bf16.mxu1 %v4067_v59  ;;  %1414 = vmatprep.mubr.bf16.mxu0 %v4067_v59 }
  0xbe   : > { %1758 = vmatmul.mubr.bf16.gmra.mxu1 %v4069_v60  ;;  %1415 = vmatmul.mubr.bf16.gmra.mxu0 %v4069_v60  ;;  %v4133_v60 = vld [vmem:[%s4570_s8 + $0x1b4] ss:$8 sps:$4 sm:$0xff]  }
  0xbf   : > { %1765 = vmatprep.mubr.bf16.mxu1 %v4070_v61  ;;  %1424 = vmatprep.mubr.bf16.mxu0 %v4070_v61 }
  0xc6   : > { %1766 = vmatmul.mubr.bf16.gmra.mxu1 %v4072_v62  ;;  %1425 = vmatmul.mubr.bf16.gmra.mxu0 %v4072_v62 }
  0xc7   : > { %1773 = vmatprep.mubr.bf16.mxu1 %v4073_v63  ;;  %1434 = vmatprep.mubr.bf16.mxu0 %v4073_v63 }
  0xce   : > { %1774 = vmatmul.mubr.bf16.gmra.mxu1 %v4075_v0  ;;  %1435 = vmatmul.mubr.bf16.gmra.mxu0 %v4075_v0 }
  0xcf   : > { %1781 = vmatprep.mubr.bf16.mxu1 %v4076_v1  ;;  %1444 = vmatprep.mubr.bf16.mxu0 %v4076_v1 }
  0xd6   : > { %1782 = vmatmul.mubr.bf16.gmra.mxu1 %v4078_v2  ;;  %1445 = vmatmul.mubr.bf16.gmra.mxu0 %v4078_v2 }
  0xd7   : > { %1789 = vmatprep.mubr.bf16.mxu1 %v4079_v3  ;;  %1454 = vmatprep.mubr.bf16.mxu0 %v4079_v3 }
  0xde   : > { %1790 = vmatmul.mubr.bf16.gmra.mxu1 %v4081_v4  ;;  %1455 = vmatmul.mubr.bf16.gmra.mxu0 %v4081_v4 }
  0xdf   : > { %1797 = vmatprep.mubr.bf16.mxu1 %v4082_v5  ;;  %1464 = vmatprep.mubr.bf16.mxu0 %v4082_v5 }
  0xe6   : > { %1798 = vmatmul.mubr.bf16.gmra.mxu1 %v4084_v6  ;;  %1465 = vmatmul.mubr.bf16.gmra.mxu0 %v4084_v6 }
  0xe7   : > { %1805 = vmatprep.mubr.bf16.mxu1 %v4085_v7  ;;  %1474 = vmatprep.mubr.bf16.mxu0 %v4085_v7  ;;  %v4135_v7 = vld [vmem:[%s4570_s8 + $0x1b0] ss:$8 sps:$4 sm:$0xff]  }
  0xee   : > { %1806 = vmatmul.mubr.bf16.gmra.mxu1 %v4087_v8  ;;  %1475 = vmatmul.mubr.bf16.gmra.mxu0 %v4087_v8 }
  0xef   : > { %1813 = vmatprep.mubr.bf16.mxu1 %v4088_v9  ;;  %1484 = vmatprep.mubr.bf16.mxu0 %v4088_v9 }
  0xf6   : > { %1814 = vmatmul.mubr.bf16.gmra.mxu1 %v4090_v10  ;;  %1485 = vmatmul.mubr.bf16.gmra.mxu0 %v4090_v10  ;;  %v4138_v10 = vld [vmem:[%s4570_s8 + $0x1c4] ss:$8 sps:$4 sm:$0xff]  }
  0xf7   : > { %1821 = vmatprep.mubr.bf16.mxu1 %v4091_v11  ;;  %1494 = vmatprep.mubr.bf16.mxu0 %v4091_v11 }
  0xfe   : > { %1822 = vmatmul.mubr.bf16.gmra.mxu1 %v4093_v12  ;;  %1495 = vmatmul.mubr.bf16.gmra.mxu0 %v4093_v12 }
  0xff   : > { %1829 = vmatprep.mubr.bf16.mxu1 %v4094_v13  ;;  %1504 = vmatprep.mubr.bf16.mxu0 %v4094_v13 }
 0x106   : > { %1830 = vmatmul.mubr.bf16.gmra.mxu1 %v4096_v14  ;;  %1505 = vmatmul.mubr.bf16.gmra.mxu0 %v4096_v14 }
 0x107   : > { %1837 = vmatprep.mubr.bf16.mxu1 %v4097_v15  ;;  %1514 = vmatprep.mubr.bf16.mxu0 %v4097_v15 }
 0x10e   : > { %1838 = vmatmul.mubr.bf16.gmra.mxu1 %v4099_v16  ;;  %1515 = vmatmul.mubr.bf16.gmra.mxu0 %v4099_v16 }
 0x10f   : > { %1845 = vmatprep.mubr.bf16.mxu1 %v4100_v17  ;;  %1524 = vmatprep.mubr.bf16.mxu0 %v4100_v17 }
 0x116   : > { %1846 = vmatmul.mubr.bf16.gmra.mxu1 %v4102_v18  ;;  %1525 = vmatmul.mubr.bf16.gmra.mxu0 %v4102_v18 }
 0x117   : > { %1853 = vmatprep.mubr.bf16.mxu1 %v4103_v19  ;;  %1534 = vmatprep.mubr.bf16.mxu0 %v4103_v19 }
 0x11e   : > { %1854 = vmatmul.mubr.bf16.gmra.mxu1 %v4105_v20  ;;  %1535 = vmatmul.mubr.bf16.gmra.mxu0 %v4105_v20 }
 0x11f   : > { %1861 = vmatprep.mubr.bf16.mxu1 %v4106_v21  ;;  %1544 = vmatprep.mubr.bf16.mxu0 %v4106_v21  ;;  %v4136_v21 = vld [vmem:[%s4570_s8 + $0x1c0] ss:$8 sps:$4 sm:$0xff]  }
 0x126   : > { %1862 = vmatmul.mubr.bf16.gmra.mxu1 %v4108_v22  ;;  %1545 = vmatmul.mubr.bf16.gmra.mxu0 %v4108_v22 }
 0x127   : > { %1869 = vmatprep.mubr.bf16.mxu1 %v4109_v23  ;;  %1554 = vmatprep.mubr.bf16.mxu0 %v4109_v23 }
 0x12e   : > { %1870 = vmatmul.mubr.bf16.gmra.mxu1 %v4111_v24  ;;  %1555 = vmatmul.mubr.bf16.gmra.mxu0 %v4111_v24  ;;  %v4141_v24 = vld [vmem:[%s4570_s8 + $0x1d4] ss:$8 sps:$4 sm:$0xff]  }
 0x12f   : > { %1877 = vmatprep.mubr.bf16.mxu1 %v4112_v25  ;;  %1564 = vmatprep.mubr.bf16.mxu0 %v4112_v25 }
 0x136   : > { %1878 = vmatmul.mubr.bf16.gmra.mxu1 %v4114_v26  ;;  %1565 = vmatmul.mubr.bf16.gmra.mxu0 %v4114_v26 }
 0x137   : > { %1885 = vmatprep.mubr.bf16.mxu1 %v4115_v27  ;;  %1574 = vmatprep.mubr.bf16.mxu0 %v4115_v27 }
 0x13e   : > { %1886 = vmatmul.mubr.bf16.gmra.mxu1 %v4117_v28  ;;  %1575 = vmatmul.mubr.bf16.gmra.mxu0 %v4117_v28 }
 0x13f   : > { %1893 = vmatprep.mubr.bf16.mxu1 %v4118_v29  ;;  %1584 = vmatprep.mubr.bf16.mxu0 %v4118_v29 }
 0x146   : > { %1894 = vmatmul.mubr.bf16.gmra.mxu1 %v4120_v30  ;;  %1585 = vmatmul.mubr.bf16.gmra.mxu0 %v4120_v30 }
 0x147   : > { %1901 = vmatprep.mubr.bf16.mxu1 %v4121_v31  ;;  %1594 = vmatprep.mubr.bf16.mxu0 %v4121_v31 }
 0x14e   : > { %1902 = vmatmul.mubr.bf16.gmra.mxu1 %v4123_v32  ;;  %1595 = vmatmul.mubr.bf16.gmra.mxu0 %v4123_v32 }
 0x14f   : > { %1909 = vmatprep.mubr.bf16.mxu1 %v4124_v33  ;;  %1604 = vmatprep.mubr.bf16.mxu0 %v4124_v33 }
 0x156   : > { %v1719_v36 = vpop.f32.mrf.mxu1  ;;  %1910 = vmatmul.mubr.bf16.gmra.mxu1 %v4126_v34  ;;  %v1366_v38 = vpop.f32.mrf.mxu0  ;;  %1605 = vmatmul.mubr.bf16.gmra.mxu0 %v4126_v34 }
 0x157   : > { %v3717_v37 = vpack.c.bf16 %v1719_v36, %v1719_v36  ;;  %1917 = vmatprep.mubr.bf16.mxu1 %v4127_v35  ;;  %1614 = vmatprep.mubr.bf16.mxu0 %v4127_v35  ;;  %v4139_v35 = vld [vmem:[%s4570_s8 + $0x1d0] ss:$8 sps:$4 sm:$0xff]  }
 0x158   : > { %v1721_v39 = vpop.f32.mrf.mxu1  ;;  %v1368_v40 = vpop.f32.mrf.mxu0 }
 0x159   : > { %3194 = vst [vmem:[%s4701_s12 + $0x8] sm:$0xf] %v3717_v37  ;;  %v3716_v41 = vpack.c.bf16 %v1368_v40, %v1366_v38  ;;  %v4144_v38 = vld [vmem:[%s4570_s8 + $0x1e4] ss:$8 sps:$4 sm:$0xff]  }
 0x15a   : > { %v1722_v42 = vpop.f32.mrf.mxu1  ;;  %v1370_v45 = vpop.f32.mrf.mxu0 }
 0x15b   : > { %v3719_v44 = vpack.c.bf16 %v1722_v42, %v1722_v42  ;;  %3193 = vst [vmem:[%s4701_s12] sm:$0xff] %v3716_v41 }
 0x15c   : > { %v1724_v47 = vpop.f32.mrf.mxu1  ;;  %v1372_v48 = vpop.f32.mrf.mxu0 }
 0x15d   : > { %3196 = vst [vmem:[%s4701_s12 + $0x14] sm:$0xf] %v3719_v44  ;;  %v3718_v49 = vpack.c.bf16 %v1372_v48, %v1370_v45 }
 0x15e   : > { %v1727_v50 = vpop.f32.mrf.mxu1  ;;  %1918 = vmatmul.mubr.bf16.gmra.mxu1 %v4129_v43  ;;  %v1376_v52 = vpop.f32.mrf.mxu0  ;;  %1615 = vmatmul.mubr.bf16.gmra.mxu0 %v4129_v43 }
 0x15f   : > { %v3721_v51 = vpack.c.bf16 %v1727_v50, %v1727_v50  ;;  %1925 = vmatprep.mubr.bf16.mxu1 %v4130_v46  ;;  %3195 = vst [vmem:[%s4701_s12 + $0xc] sm:$0xff] %v3718_v49  ;;  %1624 = vmatprep.mubr.bf16.mxu0 %v4130_v46  ;;  %v4142_v49 = vld [vmem:[%s4570_s8 + $0x1e0] ss:$8 sps:$4 sm:$0xff]  }
 0x160   : > { %v1729_v53 = vpop.f32.mrf.mxu1  ;;  %v1378_v54 = vpop.f32.mrf.mxu0 }
 0x161   : > { %3198 = vst [vmem:[%s4701_s12 + $0x20] sm:$0xf] %v3721_v51  ;;  %v3720_v55 = vpack.c.bf16 %v1378_v54, %v1376_v52  ;;  %v4147_v52 = vld [vmem:[%s4570_s8 + $0x1f4] ss:$8 sps:$4 sm:$0xff]  }
 0x162   : > { %v1730_v56 = vpop.f32.mrf.mxu1  ;;  %v1380_v59 = vpop.f32.mrf.mxu0 }
 0x163   : > { %v3723_v58 = vpack.c.bf16 %v1730_v56, %v1730_v56  ;;  %3197 = vst [vmem:[%s4701_s12 + $0x18] sm:$0xff] %v3720_v55 }
 0x164   : > { %v1732_v61 = vpop.f32.mrf.mxu1  ;;  %v1382_v62 = vpop.f32.mrf.mxu0 }
 0x165   : > { %3200 = vst [vmem:[%s4701_s12 + $0x2c] sm:$0xf] %v3723_v58  ;;  %v3722_v63 = vpack.c.bf16 %v1382_v62, %v1380_v59 }
 0x166   : > { %v1735_v0 = vpop.f32.mrf.mxu1  ;;  %1926 = vmatmul.mubr.bf16.gmra.mxu1 %v4132_v57  ;;  %v1386_v2 = vpop.f32.mrf.mxu0  ;;  %1625 = vmatmul.mubr.bf16.gmra.mxu0 %v4132_v57 }
 0x167   : > { %v3725_v1 = vpack.c.bf16 %v1735_v0, %v1735_v0  ;;  %1933 = vmatprep.mubr.bf16.mxu1 %v4133_v60  ;;  %3199 = vst [vmem:[%s4701_s12 + $0x24] sm:$0xff] %v3722_v63  ;;  %1634 = vmatprep.mubr.bf16.mxu0 %v4133_v60  ;;  %v4145_v63 = vld [vmem:[%s4570_s8 + $0x1f0] ss:$8 sps:$4 sm:$0xff]   ;;  %s4856_s8 = scalar_lea.sflag [#allocation5], %s230_s28 }
 0x168   : > { %v1737_v3 = vpop.f32.mrf.mxu1  ;;  %v1388_v4 = vpop.f32.mrf.mxu0 }
 0x169   : > { %3202 = vst [vmem:[%s4701_s12 + $0x38] sm:$0xf] %v3725_v1  ;;  %v3724_v5 = vpack.c.bf16 %v1388_v4, %v1386_v2 }
 0x16a   : > { %v1738_v6 = vpop.f32.mrf.mxu1  ;;  %v1390_v9 = vpop.f32.mrf.mxu0 }
 0x16b   : > { %v3727_v8 = vpack.c.bf16 %v1738_v6, %v1738_v6  ;;  %3201 = vst [vmem:[%s4701_s12 + $0x30] sm:$0xff] %v3724_v5 }
 0x16c   : > { %v1740_v11 = vpop.f32.mrf.mxu1  ;;  %v1392_v12 = vpop.f32.mrf.mxu0 }
 0x16d   : > { %3204 = vst [vmem:[%s4701_s12 + $0x44] sm:$0xf] %v3727_v8  ;;  %v3726_v13 = vpack.c.bf16 %v1392_v12, %v1390_v9 }
 0x16e   : > { %v1743_v14 = vpop.f32.mrf.mxu1  ;;  %1934 = vmatmul.mubr.bf16.gmra.mxu1 %v4135_v7  ;;  %v1396_v16 = vpop.f32.mrf.mxu0  ;;  %1635 = vmatmul.mubr.bf16.gmra.mxu0 %v4135_v7 }
 0x16f   : > { %v3729_v15 = vpack.c.bf16 %v1743_v14, %v1743_v14  ;;  %1941 = vmatprep.mubr.bf16.mxu1 %v4138_v10  ;;  %3203 = vst [vmem:[%s4701_s12 + $0x3c] sm:$0xff] %v3726_v13  ;;  %1644 = vmatprep.mubr.bf16.mxu0 %v4138_v10 }
 0x170   : > { %v1745_v17 = vpop.f32.mrf.mxu1  ;;  %v1398_v18 = vpop.f32.mrf.mxu0 }
 0x171   : > { %3206 = vst [vmem:[%s4701_s12 + $0x50] sm:$0xf] %v3729_v15  ;;  %v3728_v19 = vpack.c.bf16 %v1398_v18, %v1396_v16 }
 0x172   : > { %v1746_v20 = vpop.f32.mrf.mxu1  ;;  %v1400_v23 = vpop.f32.mrf.mxu0 }
 0x173   : > { %v3731_v22 = vpack.c.bf16 %v1746_v20, %v1746_v20  ;;  %3205 = vst [vmem:[%s4701_s12 + $0x48] sm:$0xff] %v3728_v19 }
 0x174   : > { %v1748_v25 = vpop.f32.mrf.mxu1  ;;  %v1402_v26 = vpop.f32.mrf.mxu0 }
 0x175   : > { %3208 = vst [vmem:[%s4701_s12 + $0x5c] sm:$0xf] %v3731_v22  ;;  %v3730_v27 = vpack.c.bf16 %v1402_v26, %v1400_v23 }
 0x176   : > { %v1751_v28 = vpop.f32.mrf.mxu1  ;;  %1942 = vmatmul.mubr.bf16.gmra.mxu1 %v4136_v21  ;;  %v1406_v30 = vpop.f32.mrf.mxu0  ;;  %1645 = vmatmul.mubr.bf16.gmra.mxu0 %v4136_v21 }
 0x177   : > { %v3733_v29 = vpack.c.bf16 %v1751_v28, %v1751_v28  ;;  %1949 = vmatprep.mubr.bf16.mxu1 %v4141_v24  ;;  %3207 = vst [vmem:[%s4701_s12 + $0x54] sm:$0xff] %v3730_v27  ;;  %1654 = vmatprep.mubr.bf16.mxu0 %v4141_v24 }
 0x178   : > { %v1753_v31 = vpop.f32.mrf.mxu1  ;;  %v1408_v32 = vpop.f32.mrf.mxu0 }
 0x179   : > { %3210 = vst [vmem:[%s4701_s12 + $0x68] sm:$0xf] %v3733_v29  ;;  %v3732_v33 = vpack.c.bf16 %v1408_v32, %v1406_v30 }
 0x17a   : > { %v1754_v34 = vpop.f32.mrf.mxu1  ;;  %v1410_v37 = vpop.f32.mrf.mxu0 }
 0x17b   : > { %v3735_v36 = vpack.c.bf16 %v1754_v34, %v1754_v34  ;;  %3209 = vst [vmem:[%s4701_s12 + $0x60] sm:$0xff] %v3732_v33 }
 0x17c   : > { %v1756_v39 = vpop.f32.mrf.mxu1  ;;  %v1412_v40 = vpop.f32.mrf.mxu0 }
 0x17d   : > { %3212 = vst [vmem:[%s4701_s12 + $0x74] sm:$0xf] %v3735_v36  ;;  %v3734_v41 = vpack.c.bf16 %v1412_v40, %v1410_v37 }
 0x17e   : > { %v1759_v42 = vpop.f32.mrf.mxu1  ;;  %1950 = vmatmul.mubr.bf16.gmra.mxu1 %v4139_v35  ;;  %v1416_v44 = vpop.f32.mrf.mxu0  ;;  %1655 = vmatmul.mubr.bf16.gmra.mxu0 %v4139_v35 }
 0x17f   : > { %v3737_v43 = vpack.c.bf16 %v1759_v42, %v1759_v42  ;;  %1957 = vmatprep.mubr.bf16.mxu1 %v4144_v38  ;;  %3211 = vst [vmem:[%s4701_s12 + $0x6c] sm:$0xff] %v3734_v41  ;;  %1664 = vmatprep.mubr.bf16.mxu0 %v4144_v38 }
 0x180   : > { %v1761_v45 = vpop.f32.mrf.mxu1  ;;  %v1418_v46 = vpop.f32.mrf.mxu0 }
 0x181   : > { %3214 = vst [vmem:[%s4701_s12 + $0x80] sm:$0xf] %v3737_v43  ;;  %v3736_v47 = vpack.c.bf16 %v1418_v46, %v1416_v44 }
 0x182   : > { %v1762_v48 = vpop.f32.mrf.mxu1  ;;  %v1420_v51 = vpop.f32.mrf.mxu0 }
 0x183   : > { %v3739_v50 = vpack.c.bf16 %v1762_v48, %v1762_v48  ;;  %3213 = vst [vmem:[%s4701_s12 + $0x78] sm:$0xff] %v3736_v47 }
 0x184   : > { %v1764_v53 = vpop.f32.mrf.mxu1  ;;  %v1422_v54 = vpop.f32.mrf.mxu0 }
 0x185   : > { %3216 = vst [vmem:[%s4701_s12 + $0x8c] sm:$0xf] %v3739_v50  ;;  %v3738_v55 = vpack.c.bf16 %v1422_v54, %v1420_v51 }
 0x186   : > { %v1767_v56 = vpop.f32.mrf.mxu1  ;;  %1958 = vmatmul.mubr.bf16.gmra.mxu1 %v4142_v49  ;;  %v1426_v58 = vpop.f32.mrf.mxu0  ;;  %1665 = vmatmul.mubr.bf16.gmra.mxu0 %v4142_v49 }
 0x187   : > { %v3741_v57 = vpack.c.bf16 %v1767_v56, %v1767_v56  ;;  %1965 = vmatprep.mubr.bf16.mxu1 %v4147_v52  ;;  %3215 = vst [vmem:[%s4701_s12 + $0x84] sm:$0xff] %v3738_v55  ;;  %1674 = vmatprep.mubr.bf16.mxu0 %v4147_v52 }
 0x188   : > { %v1769_v59 = vpop.f32.mrf.mxu1  ;;  %v1428_v60 = vpop.f32.mrf.mxu0 }
 0x189   : > { %3218 = vst [vmem:[%s4701_s12 + $0x98] sm:$0xf] %v3741_v57  ;;  %v3740_v61 = vpack.c.bf16 %v1428_v60, %v1426_v58 }
 0x18a   : > { %v1770_v62 = vpop.f32.mrf.mxu1  ;;  %v1430_v1 = vpop.f32.mrf.mxu0 }
 0x18b   : > { %v3743_v0 = vpack.c.bf16 %v1770_v62, %v1770_v62  ;;  %3217 = vst [vmem:[%s4701_s12 + $0x90] sm:$0xff] %v3740_v61 }
 0x18c   : > { %v1772_v2 = vpop.f32.mrf.mxu1  ;;  %v1432_v3 = vpop.f32.mrf.mxu0 }
 0x18d   : > { %3220 = vst [vmem:[%s4701_s12 + $0xa4] sm:$0xf] %v3743_v0  ;;  %v3742_v4 = vpack.c.bf16 %v1432_v3, %v1430_v1 }
 0x18e   : > { %v1775_v5 = vpop.f32.mrf.mxu1  ;;  %1966 = vmatmul.mubr.bf16.gmra.mxu1 %v4145_v63  ;;  %v1436_v7 = vpop.f32.mrf.mxu0  ;;  %1675 = vmatmul.mubr.bf16.gmra.mxu0 %v4145_v63 }
 0x18f   : > { %v3745_v6 = vpack.c.bf16 %v1775_v5, %v1775_v5  ;;  %3219 = vst [vmem:[%s4701_s12 + $0x9c] sm:$0xff] %v3742_v4 }
 0x190   : > { %v1777_v8 = vpop.f32.mrf.mxu1  ;;  %v1438_v9 = vpop.f32.mrf.mxu0 }
 0x191   : > { %3222 = vst [vmem:[%s4701_s12 + $0xb0] sm:$0xf] %v3745_v6  ;;  %v3744_v10 = vpack.c.bf16 %v1438_v9, %v1436_v7 }
 0x192   : > { %v1778_v11 = vpop.f32.mrf.mxu1  ;;  %v1440_v13 = vpop.f32.mrf.mxu0 }
 0x193   : > { %v3747_v12 = vpack.c.bf16 %v1778_v11, %v1778_v11  ;;  %3221 = vst [vmem:[%s4701_s12 + $0xa8] sm:$0xff] %v3744_v10 }
 0x194   : > { %v1780_v14 = vpop.f32.mrf.mxu1  ;;  %v1442_v15 = vpop.f32.mrf.mxu0 }
 0x195   : > { %3224 = vst [vmem:[%s4701_s12 + $0xbc] sm:$0xf] %v3747_v12  ;;  %v3746_v16 = vpack.c.bf16 %v1442_v15, %v1440_v13 }
 0x196   : > { %v1783_v17 = vpop.f32.mrf.mxu1  ;;  %v1446_v19 = vpop.f32.mrf.mxu0 }
 0x197   : > { %v3749_v18 = vpack.c.bf16 %v1783_v17, %v1783_v17  ;;  %3223 = vst [vmem:[%s4701_s12 + $0xb4] sm:$0xff] %v3746_v16 }
 0x198   : > { %v1785_v20 = vpop.f32.mrf.mxu1  ;;  %v1448_v21 = vpop.f32.mrf.mxu0 }
 0x199   : > { %3226 = vst [vmem:[%s4701_s12 + $0xc8] sm:$0xf] %v3749_v18  ;;  %v3748_v22 = vpack.c.bf16 %v1448_v21, %v1446_v19 }
 0x19a   : > { %v1786_v23 = vpop.f32.mrf.mxu1  ;;  %v1450_v25 = vpop.f32.mrf.mxu0 }
 0x19b   : > { %v3751_v24 = vpack.c.bf16 %v1786_v23, %v1786_v23  ;;  %3225 = vst [vmem:[%s4701_s12 + $0xc0] sm:$0xff] %v3748_v22 }
 0x19c   : > { %v1788_v26 = vpop.f32.mrf.mxu1  ;;  %v1452_v27 = vpop.f32.mrf.mxu0 }
 0x19d   : > { %3228 = vst [vmem:[%s4701_s12 + $0xd4] sm:$0xf] %v3751_v24  ;;  %v3750_v28 = vpack.c.bf16 %v1452_v27, %v1450_v25 }
 0x19e   : > { %v1791_v29 = vpop.f32.mrf.mxu1  ;;  %v1456_v31 = vpop.f32.mrf.mxu0 }
 0x19f   : > { %v3753_v30 = vpack.c.bf16 %v1791_v29, %v1791_v29  ;;  %3227 = vst [vmem:[%s4701_s12 + $0xcc] sm:$0xff] %v3750_v28 }
 0x1a0   : > { %v1793_v32 = vpop.f32.mrf.mxu1  ;;  %v1458_v33 = vpop.f32.mrf.mxu0 }
 0x1a1   : > { %3230 = vst [vmem:[%s4701_s12 + $0xe0] sm:$0xf] %v3753_v30  ;;  %v3752_v34 = vpack.c.bf16 %v1458_v33, %v1456_v31 }
 0x1a2   : > { %v1794_v35 = vpop.f32.mrf.mxu1  ;;  %v1460_v37 = vpop.f32.mrf.mxu0 }
 0x1a3   : > { %v3755_v36 = vpack.c.bf16 %v1794_v35, %v1794_v35  ;;  %3229 = vst [vmem:[%s4701_s12 + $0xd8] sm:$0xff] %v3752_v34 }
 0x1a4   : > { %v1796_v38 = vpop.f32.mrf.mxu1  ;;  %v1462_v39 = vpop.f32.mrf.mxu0 }
 0x1a5   : > { %3232 = vst [vmem:[%s4701_s12 + $0xec] sm:$0xf] %v3755_v36  ;;  %v3754_v40 = vpack.c.bf16 %v1462_v39, %v1460_v37 }
 0x1a6   : > { %v1799_v41 = vpop.f32.mrf.mxu1  ;;  %v1466_v43 = vpop.f32.mrf.mxu0 }
 0x1a7   : > { %v3757_v42 = vpack.c.bf16 %v1799_v41, %v1799_v41  ;;  %3231 = vst [vmem:[%s4701_s12 + $0xe4] sm:$0xff] %v3754_v40 }
 0x1a8   : > { %v1801_v44 = vpop.f32.mrf.mxu1  ;;  %v1468_v45 = vpop.f32.mrf.mxu0 }
 0x1a9   : > { %3234 = vst [vmem:[%s4701_s12 + $0xf8] sm:$0xf] %v3757_v42  ;;  %v3756_v46 = vpack.c.bf16 %v1468_v45, %v1466_v43 }
 0x1aa   : > { %v1802_v47 = vpop.f32.mrf.mxu1  ;;  %v1470_v49 = vpop.f32.mrf.mxu0 }
 0x1ab   : > { %v3759_v48 = vpack.c.bf16 %v1802_v47, %v1802_v47  ;;  %3233 = vst [vmem:[%s4701_s12 + $0xf0] sm:$0xff] %v3756_v46 }
 0x1ac   : > { %v1804_v50 = vpop.f32.mrf.mxu1  ;;  %v1472_v51 = vpop.f32.mrf.mxu0 }
 0x1ad   : > { %3236 = vst [vmem:[%s4701_s12 + $0x104] sm:$0xf] %v3759_v48  ;;  %v3758_v52 = vpack.c.bf16 %v1472_v51, %v1470_v49 }
 0x1ae   : > { %v1807_v53 = vpop.f32.mrf.mxu1  ;;  %v1476_v55 = vpop.f32.mrf.mxu0 }
 0x1af   : > { %v3761_v54 = vpack.c.bf16 %v1807_v53, %v1807_v53  ;;  %3235 = vst [vmem:[%s4701_s12 + $0xfc] sm:$0xff] %v3758_v52 }
 0x1b0   : > { %v1809_v56 = vpop.f32.mrf.mxu1  ;;  %v1478_v57 = vpop.f32.mrf.mxu0 }
 0x1b1   : > { %3238 = vst [vmem:[%s4701_s12 + $0x110] sm:$0xf] %v3761_v54  ;;  %v3760_v58 = vpack.c.bf16 %v1478_v57, %v1476_v55 }
 0x1b2   : > { %v1810_v59 = vpop.f32.mrf.mxu1  ;;  %v1480_v61 = vpop.f32.mrf.mxu0 }
 0x1b3   : > { %v3763_v60 = vpack.c.bf16 %v1810_v59, %v1810_v59  ;;  %3237 = vst [vmem:[%s4701_s12 + $0x108] sm:$0xff] %v3760_v58 }
 0x1b4   : > { %v1812_v62 = vpop.f32.mrf.mxu1  ;;  %v1482_v63 = vpop.f32.mrf.mxu0 }
 0x1b5   : > { %3240 = vst [vmem:[%s4701_s12 + $0x11c] sm:$0xf] %v3763_v60  ;;  %v3762_v0 = vpack.c.bf16 %v1482_v63, %v1480_v61 }
 0x1b6   : > { %v1815_v1 = vpop.f32.mrf.mxu1  ;;  %v1486_v3 = vpop.f32.mrf.mxu0 }
 0x1b7   : > { %v3765_v2 = vpack.c.bf16 %v1815_v1, %v1815_v1  ;;  %3239 = vst [vmem:[%s4701_s12 + $0x114] sm:$0xff] %v3762_v0 }
 0x1b8   : > { %v1817_v4 = vpop.f32.mrf.mxu1  ;;  %v1488_v5 = vpop.f32.mrf.mxu0 }
 0x1b9   : > { %3242 = vst [vmem:[%s4701_s12 + $0x128] sm:$0xf] %v3765_v2  ;;  %v3764_v6 = vpack.c.bf16 %v1488_v5, %v1486_v3 }
 0x1ba   : > { %v1818_v7 = vpop.f32.mrf.mxu1  ;;  %v1490_v9 = vpop.f32.mrf.mxu0 }
 0x1bb   : > { %v3767_v8 = vpack.c.bf16 %v1818_v7, %v1818_v7  ;;  %3241 = vst [vmem:[%s4701_s12 + $0x120] sm:$0xff] %v3764_v6 }
 0x1bc   : > { %v1820_v10 = vpop.f32.mrf.mxu1  ;;  %v1492_v11 = vpop.f32.mrf.mxu0 }
 0x1bd   : > { %3244 = vst [vmem:[%s4701_s12 + $0x134] sm:$0xf] %v3767_v8  ;;  %v3766_v12 = vpack.c.bf16 %v1492_v11, %v1490_v9 }
 0x1be   : > { %v1823_v13 = vpop.f32.mrf.mxu1  ;;  %v1496_v15 = vpop.f32.mrf.mxu0 }
 0x1bf   : > { %v3769_v14 = vpack.c.bf16 %v1823_v13, %v1823_v13  ;;  %3243 = vst [vmem:[%s4701_s12 + $0x12c] sm:$0xff] %v3766_v12 }
 0x1c0   : > { %v1825_v16 = vpop.f32.mrf.mxu1  ;;  %v1498_v17 = vpop.f32.mrf.mxu0 }
 0x1c1   : > { %3246 = vst [vmem:[%s4701_s12 + $0x140] sm:$0xf] %v3769_v14  ;;  %v3768_v18 = vpack.c.bf16 %v1498_v17, %v1496_v15 }
 0x1c2   : > { %v1826_v19 = vpop.f32.mrf.mxu1  ;;  %v1500_v21 = vpop.f32.mrf.mxu0 }
 0x1c3   : > { %v3771_v20 = vpack.c.bf16 %v1826_v19, %v1826_v19  ;;  %3245 = vst [vmem:[%s4701_s12 + $0x138] sm:$0xff] %v3768_v18 }
 0x1c4   : > { %v1828_v22 = vpop.f32.mrf.mxu1  ;;  %v1502_v23 = vpop.f32.mrf.mxu0 }
 0x1c5   : > { %3248 = vst [vmem:[%s4701_s12 + $0x14c] sm:$0xf] %v3771_v20  ;;  %v3770_v24 = vpack.c.bf16 %v1502_v23, %v1500_v21 }
 0x1c6   : > { %v1831_v25 = vpop.f32.mrf.mxu1  ;;  %v1506_v27 = vpop.f32.mrf.mxu0 }
 0x1c7   : > { %v3773_v26 = vpack.c.bf16 %v1831_v25, %v1831_v25  ;;  %3247 = vst [vmem:[%s4701_s12 + $0x144] sm:$0xff] %v3770_v24 }
 0x1c8   : > { %v1833_v28 = vpop.f32.mrf.mxu1  ;;  %v1508_v29 = vpop.f32.mrf.mxu0 }
 0x1c9   : > { %3250 = vst [vmem:[%s4701_s12 + $0x158] sm:$0xf] %v3773_v26  ;;  %v3772_v30 = vpack.c.bf16 %v1508_v29, %v1506_v27 }
 0x1ca   : > { %v1834_v31 = vpop.f32.mrf.mxu1  ;;  %v1510_v33 = vpop.f32.mrf.mxu0 }
 0x1cb   : > { %v3775_v32 = vpack.c.bf16 %v1834_v31, %v1834_v31  ;;  %3249 = vst [vmem:[%s4701_s12 + $0x150] sm:$0xff] %v3772_v30 }
 0x1cc   : > { %v1836_v34 = vpop.f32.mrf.mxu1  ;;  %v1512_v35 = vpop.f32.mrf.mxu0 }
 0x1cd   : > { %3252 = vst [vmem:[%s4701_s12 + $0x164] sm:$0xf] %v3775_v32  ;;  %v3774_v36 = vpack.c.bf16 %v1512_v35, %v1510_v33 }
 0x1ce   : > { %v1839_v37 = vpop.f32.mrf.mxu1  ;;  %v1516_v39 = vpop.f32.mrf.mxu0 }
 0x1cf   : > { %v3777_v38 = vpack.c.bf16 %v1839_v37, %v1839_v37  ;;  %3251 = vst [vmem:[%s4701_s12 + $0x15c] sm:$0xff] %v3774_v36 }
 0x1d0   : > { %v1841_v40 = vpop.f32.mrf.mxu1  ;;  %v1518_v41 = vpop.f32.mrf.mxu0 }
 0x1d1   : > { %3254 = vst [vmem:[%s4701_s12 + $0x170] sm:$0xf] %v3777_v38  ;;  %v3776_v42 = vpack.c.bf16 %v1518_v41, %v1516_v39 }
 0x1d2   : > { %v1842_v43 = vpop.f32.mrf.mxu1  ;;  %v1520_v45 = vpop.f32.mrf.mxu0 }
 0x1d3   : > { %v3779_v44 = vpack.c.bf16 %v1842_v43, %v1842_v43  ;;  %3253 = vst [vmem:[%s4701_s12 + $0x168] sm:$0xff] %v3776_v42 }
 0x1d4   : > { %v1844_v46 = vpop.f32.mrf.mxu1  ;;  %v1522_v47 = vpop.f32.mrf.mxu0 }
 0x1d5   : > { %3256 = vst [vmem:[%s4701_s12 + $0x17c] sm:$0xf] %v3779_v44  ;;  %v3778_v48 = vpack.c.bf16 %v1522_v47, %v1520_v45 }
 0x1d6   : > { %v1847_v49 = vpop.f32.mrf.mxu1  ;;  %v1526_v51 = vpop.f32.mrf.mxu0 }
 0x1d7   : > { %v3781_v50 = vpack.c.bf16 %v1847_v49, %v1847_v49  ;;  %3255 = vst [vmem:[%s4701_s12 + $0x174] sm:$0xff] %v3778_v48 }
 0x1d8   : > { %v1849_v52 = vpop.f32.mrf.mxu1  ;;  %v1528_v53 = vpop.f32.mrf.mxu0 }
 0x1d9   : > { %3258 = vst [vmem:[%s4701_s12 + $0x188] sm:$0xf] %v3781_v50  ;;  %v3780_v54 = vpack.c.bf16 %v1528_v53, %v1526_v51 }
 0x1da   : > { %v1850_v55 = vpop.f32.mrf.mxu1  ;;  %v1530_v57 = vpop.f32.mrf.mxu0 }
 0x1db   : > { %v3783_v56 = vpack.c.bf16 %v1850_v55, %v1850_v55  ;;  %3257 = vst [vmem:[%s4701_s12 + $0x180] sm:$0xff] %v3780_v54 }
 0x1dc   : > { %v1852_v58 = vpop.f32.mrf.mxu1  ;;  %v1532_v59 = vpop.f32.mrf.mxu0 }
 0x1dd   : > { %3260 = vst [vmem:[%s4701_s12 + $0x194] sm:$0xf] %v3783_v56  ;;  %v3782_v60 = vpack.c.bf16 %v1532_v59, %v1530_v57 }
 0x1de   : > { %v1855_v61 = vpop.f32.mrf.mxu1  ;;  %v1536_v63 = vpop.f32.mrf.mxu0 }
 0x1df   : > { %v3785_v62 = vpack.c.bf16 %v1855_v61, %v1855_v61  ;;  %3259 = vst [vmem:[%s4701_s12 + $0x18c] sm:$0xff] %v3782_v60 }
 0x1e0   : > { %v1857_v0 = vpop.f32.mrf.mxu1  ;;  %v1538_v1 = vpop.f32.mrf.mxu0 }
 0x1e1   : > { %3262 = vst [vmem:[%s4701_s12 + $0x1a0] sm:$0xf] %v3785_v62  ;;  %v3784_v2 = vpack.c.bf16 %v1538_v1, %v1536_v63 }
 0x1e2   : > { %v1858_v3 = vpop.f32.mrf.mxu1  ;;  %v1540_v5 = vpop.f32.mrf.mxu0 }
 0x1e3   : > { %v3787_v4 = vpack.c.bf16 %v1858_v3, %v1858_v3  ;;  %3261 = vst [vmem:[%s4701_s12 + $0x198] sm:$0xff] %v3784_v2 }
 0x1e4   : > { %v1860_v6 = vpop.f32.mrf.mxu1  ;;  %v1542_v7 = vpop.f32.mrf.mxu0 }
 0x1e5   : > { %3264 = vst [vmem:[%s4701_s12 + $0x1ac] sm:$0xf] %v3787_v4  ;;  %v3786_v8 = vpack.c.bf16 %v1542_v7, %v1540_v5 }
 0x1e6   : > { %v1863_v9 = vpop.f32.mrf.mxu1  ;;  %v1546_v11 = vpop.f32.mrf.mxu0 }
 0x1e7   : > { %v3789_v10 = vpack.c.bf16 %v1863_v9, %v1863_v9  ;;  %3263 = vst [vmem:[%s4701_s12 + $0x1a4] sm:$0xff] %v3786_v8 }
 0x1e8   : > { %v1865_v12 = vpop.f32.mrf.mxu1  ;;  %v1548_v13 = vpop.f32.mrf.mxu0 }
 0x1e9   : > { %3266 = vst [vmem:[%s4701_s12 + $0x1b8] sm:$0xf] %v3789_v10  ;;  %v3788_v14 = vpack.c.bf16 %v1548_v13, %v1546_v11 }
 0x1ea   : > { %v1866_v15 = vpop.f32.mrf.mxu1  ;;  %v1550_v17 = vpop.f32.mrf.mxu0 }
 0x1eb   : > { %v3791_v16 = vpack.c.bf16 %v1866_v15, %v1866_v15  ;;  %3265 = vst [vmem:[%s4701_s12 + $0x1b0] sm:$0xff] %v3788_v14 }
 0x1ec   : > { %v1868_v18 = vpop.f32.mrf.mxu1  ;;  %v1552_v19 = vpop.f32.mrf.mxu0 }
 0x1ed   : > { %3268 = vst [vmem:[%s4701_s12 + $0x1c4] sm:$0xf] %v3791_v16  ;;  %v3790_v20 = vpack.c.bf16 %v1552_v19, %v1550_v17 }
 0x1ee   : > { %v1871_v21 = vpop.f32.mrf.mxu1  ;;  %v1556_v23 = vpop.f32.mrf.mxu0 }
 0x1ef   : > { %v3793_v22 = vpack.c.bf16 %v1871_v21, %v1871_v21  ;;  %3267 = vst [vmem:[%s4701_s12 + $0x1bc] sm:$0xff] %v3790_v20 }
 0x1f0   : > { %v1873_v24 = vpop.f32.mrf.mxu1  ;;  %v1558_v25 = vpop.f32.mrf.mxu0 }
 0x1f1   : > { %3270 = vst [vmem:[%s4701_s12 + $0x1d0] sm:$0xf] %v3793_v22  ;;  %v3792_v26 = vpack.c.bf16 %v1558_v25, %v1556_v23 }
 0x1f2   : > { %v1874_v27 = vpop.f32.mrf.mxu1  ;;  %v1560_v29 = vpop.f32.mrf.mxu0 }
 0x1f3   : > { %v3795_v28 = vpack.c.bf16 %v1874_v27, %v1874_v27  ;;  %3269 = vst [vmem:[%s4701_s12 + $0x1c8] sm:$0xff] %v3792_v26 }
 0x1f4   : > { %v1876_v30 = vpop.f32.mrf.mxu1  ;;  %v1562_v31 = vpop.f32.mrf.mxu0 }
 0x1f5   : > { %3272 = vst [vmem:[%s4701_s12 + $0x1dc] sm:$0xf] %v3795_v28  ;;  %v3794_v32 = vpack.c.bf16 %v1562_v31, %v1560_v29 }
 0x1f6   : > { %v1879_v33 = vpop.f32.mrf.mxu1  ;;  %v1566_v35 = vpop.f32.mrf.mxu0 }
 0x1f7   : > { %v3797_v34 = vpack.c.bf16 %v1879_v33, %v1879_v33  ;;  %3271 = vst [vmem:[%s4701_s12 + $0x1d4] sm:$0xff] %v3794_v32 }
 0x1f8   : > { %v1881_v36 = vpop.f32.mrf.mxu1  ;;  %v1568_v37 = vpop.f32.mrf.mxu0 }
 0x1f9   : > { %3274 = vst [vmem:[%s4701_s12 + $0x1e8] sm:$0xf] %v3797_v34  ;;  %v3796_v38 = vpack.c.bf16 %v1568_v37, %v1566_v35 }
 0x1fa   : > { %v1882_v39 = vpop.f32.mrf.mxu1  ;;  %v1570_v41 = vpop.f32.mrf.mxu0 }
 0x1fb   : > { %v3799_v40 = vpack.c.bf16 %v1882_v39, %v1882_v39  ;;  %3273 = vst [vmem:[%s4701_s12 + $0x1e0] sm:$0xff] %v3796_v38 }
 0x1fc   : > { %v1884_v42 = vpop.f32.mrf.mxu1  ;;  %v1572_v43 = vpop.f32.mrf.mxu0 }
 0x1fd   : > { %3276 = vst [vmem:[%s4701_s12 + $0x1f4] sm:$0xf] %v3799_v40  ;;  %v3798_v44 = vpack.c.bf16 %v1572_v43, %v1570_v41 }
 0x1fe   : > { %v1887_v45 = vpop.f32.mrf.mxu1  ;;  %v1576_v47 = vpop.f32.mrf.mxu0 }
 0x1ff   : > { %v3801_v46 = vpack.c.bf16 %v1887_v45, %v1887_v45  ;;  %3275 = vst [vmem:[%s4701_s12 + $0x1ec] sm:$0xff] %v3798_v44 }
 0x200   : > { %v1889_v48 = vpop.f32.mrf.mxu1  ;;  %v1578_v49 = vpop.f32.mrf.mxu0 }
 0x201   : > { %3278 = vst [vmem:[%s4701_s12 + $0x200] sm:$0xf] %v3801_v46  ;;  %v3800_v50 = vpack.c.bf16 %v1578_v49, %v1576_v47 }
 0x202   : > { %v1890_v51 = vpop.f32.mrf.mxu1  ;;  %v1580_v53 = vpop.f32.mrf.mxu0 }
 0x203   : > { %v3803_v52 = vpack.c.bf16 %v1890_v51, %v1890_v51  ;;  %3277 = vst [vmem:[%s4701_s12 + $0x1f8] sm:$0xff] %v3800_v50 }
 0x204   : > { %v1892_v54 = vpop.f32.mrf.mxu1  ;;  %v1582_v55 = vpop.f32.mrf.mxu0 }
 0x205   : > { %3280 = vst [vmem:[%s4701_s12 + $0x20c] sm:$0xf] %v3803_v52  ;;  %v3802_v56 = vpack.c.bf16 %v1582_v55, %v1580_v53 }
 0x206   : > { %v1895_v57 = vpop.f32.mrf.mxu1  ;;  %v1586_v59 = vpop.f32.mrf.mxu0 }
 0x207   : > { %v3805_v58 = vpack.c.bf16 %v1895_v57, %v1895_v57  ;;  %3279 = vst [vmem:[%s4701_s12 + $0x204] sm:$0xff] %v3802_v56 }
 0x208   : > { %v1897_v60 = vpop.f32.mrf.mxu1  ;;  %v1588_v61 = vpop.f32.mrf.mxu0 }
 0x209   : > { %3282 = vst [vmem:[%s4701_s12 + $0x218] sm:$0xf] %v3805_v58  ;;  %v3804_v62 = vpack.c.bf16 %v1588_v61, %v1586_v59 }
 0x20a   : > { %v1898_v63 = vpop.f32.mrf.mxu1  ;;  %v1590_v1 = vpop.f32.mrf.mxu0 }
 0x20b   : > { %v3807_v0 = vpack.c.bf16 %v1898_v63, %v1898_v63  ;;  %3281 = vst [vmem:[%s4701_s12 + $0x210] sm:$0xff] %v3804_v62 }
 0x20c   : > { %v1900_v2 = vpop.f32.mrf.mxu1  ;;  %v1592_v3 = vpop.f32.mrf.mxu0 }
 0x20d   : > { %3284 = vst [vmem:[%s4701_s12 + $0x224] sm:$0xf] %v3807_v0  ;;  %v3806_v4 = vpack.c.bf16 %v1592_v3, %v1590_v1 }
 0x20e   : > { %v1903_v5 = vpop.f32.mrf.mxu1  ;;  %v1596_v7 = vpop.f32.mrf.mxu0 }
 0x20f   : > { %v3809_v6 = vpack.c.bf16 %v1903_v5, %v1903_v5  ;;  %3283 = vst [vmem:[%s4701_s12 + $0x21c] sm:$0xff] %v3806_v4 }
 0x210   : > { %v1905_v8 = vpop.f32.mrf.mxu1  ;;  %v1598_v9 = vpop.f32.mrf.mxu0 }
 0x211   : > { %3286 = vst [vmem:[%s4701_s12 + $0x230] sm:$0xf] %v3809_v6  ;;  %v3808_v10 = vpack.c.bf16 %v1598_v9, %v1596_v7 }
 0x212   : > { %v1906_v11 = vpop.f32.mrf.mxu1  ;;  %v1600_v13 = vpop.f32.mrf.mxu0 }
 0x213   : > { %v3811_v12 = vpack.c.bf16 %v1906_v11, %v1906_v11  ;;  %3285 = vst [vmem:[%s4701_s12 + $0x228] sm:$0xff] %v3808_v10 }
 0x214   : > { %v1908_v14 = vpop.f32.mrf.mxu1  ;;  %v1602_v15 = vpop.f32.mrf.mxu0 }
 0x215   : > { %3288 = vst [vmem:[%s4701_s12 + $0x23c] sm:$0xf] %v3811_v12  ;;  %v3810_v16 = vpack.c.bf16 %v1602_v15, %v1600_v13 }
 0x216   : > { %v1911_v17 = vpop.f32.mrf.mxu1  ;;  %v1606_v19 = vpop.f32.mrf.mxu0 }
 0x217   : > { %v3813_v18 = vpack.c.bf16 %v1911_v17, %v1911_v17  ;;  %3287 = vst [vmem:[%s4701_s12 + $0x234] sm:$0xff] %v3810_v16 }
 0x218   : > { %v1913_v20 = vpop.f32.mrf.mxu1  ;;  %v1608_v21 = vpop.f32.mrf.mxu0 }
 0x219   : > { %3290 = vst [vmem:[%s4701_s12 + $0x248] sm:$0xf] %v3813_v18  ;;  %v3812_v22 = vpack.c.bf16 %v1608_v21, %v1606_v19 }
 0x21a   : > { %v1914_v23 = vpop.f32.mrf.mxu1  ;;  %v1610_v25 = vpop.f32.mrf.mxu0 }
 0x21b   : > { %v3815_v24 = vpack.c.bf16 %v1914_v23, %v1914_v23  ;;  %3289 = vst [vmem:[%s4701_s12 + $0x240] sm:$0xff] %v3812_v22 }
 0x21c   : > { %v1916_v26 = vpop.f32.mrf.mxu1  ;;  %v1612_v27 = vpop.f32.mrf.mxu0 }
 0x21d   : > { %3292 = vst [vmem:[%s4701_s12 + $0x254] sm:$0xf] %v3815_v24  ;;  %v3814_v28 = vpack.c.bf16 %v1612_v27, %v1610_v25 }
 0x21e   : > { %v1919_v29 = vpop.f32.mrf.mxu1  ;;  %v1616_v31 = vpop.f32.mrf.mxu0 }
 0x21f   : > { %v3817_v30 = vpack.c.bf16 %v1919_v29, %v1919_v29  ;;  %3291 = vst [vmem:[%s4701_s12 + $0x24c] sm:$0xff] %v3814_v28 }
 0x220   : > { %v1921_v32 = vpop.f32.mrf.mxu1  ;;  %v1618_v33 = vpop.f32.mrf.mxu0 }
 0x221   : > { %3294 = vst [vmem:[%s4701_s12 + $0x260] sm:$0xf] %v3817_v30  ;;  %v3816_v34 = vpack.c.bf16 %v1618_v33, %v1616_v31 }
 0x222   : > { %v1922_v35 = vpop.f32.mrf.mxu1  ;;  %v1620_v37 = vpop.f32.mrf.mxu0 }
 0x223   : > { %v3819_v36 = vpack.c.bf16 %v1922_v35, %v1922_v35  ;;  %3293 = vst [vmem:[%s4701_s12 + $0x258] sm:$0xff] %v3816_v34 }
 0x224   : > { %v1924_v38 = vpop.f32.mrf.mxu1  ;;  %v1622_v39 = vpop.f32.mrf.mxu0 }
 0x225   : > { %3296 = vst [vmem:[%s4701_s12 + $0x26c] sm:$0xf] %v3819_v36  ;;  %v3818_v40 = vpack.c.bf16 %v1622_v39, %v1620_v37 }
 0x226   : > { %v1927_v41 = vpop.f32.mrf.mxu1  ;;  %v1626_v43 = vpop.f32.mrf.mxu0 }
 0x227   : > { %v3821_v42 = vpack.c.bf16 %v1927_v41, %v1927_v41  ;;  %3295 = vst [vmem:[%s4701_s12 + $0x264] sm:$0xff] %v3818_v40 }
 0x228   : > { %v1929_v44 = vpop.f32.mrf.mxu1  ;;  %v1628_v45 = vpop.f32.mrf.mxu0 }
 0x229   : > { %3298 = vst [vmem:[%s4701_s12 + $0x278] sm:$0xf] %v3821_v42  ;;  %v3820_v46 = vpack.c.bf16 %v1628_v45, %v1626_v43 }
 0x22a   : > { %v1930_v47 = vpop.f32.mrf.mxu1  ;;  %v1630_v49 = vpop.f32.mrf.mxu0 }
 0x22b   : > { %v3823_v48 = vpack.c.bf16 %v1930_v47, %v1930_v47  ;;  %3297 = vst [vmem:[%s4701_s12 + $0x270] sm:$0xff] %v3820_v46 }
 0x22c   : > { %v1932_v50 = vpop.f32.mrf.mxu1  ;;  %v1632_v51 = vpop.f32.mrf.mxu0 }
 0x22d   : > { %3300 = vst [vmem:[%s4701_s12 + $0x284] sm:$0xf] %v3823_v48  ;;  %v3822_v52 = vpack.c.bf16 %v1632_v51, %v1630_v49 }
 0x22e   : > { %v1935_v53 = vpop.f32.mrf.mxu1  ;;  %v1636_v55 = vpop.f32.mrf.mxu0 }
 0x22f   : > { %v3825_v54 = vpack.c.bf16 %v1935_v53, %v1935_v53  ;;  %3299 = vst [vmem:[%s4701_s12 + $0x27c] sm:$0xff] %v3822_v52 }
 0x230   : > { %v1937_v56 = vpop.f32.mrf.mxu1  ;;  %v1638_v57 = vpop.f32.mrf.mxu0 }
 0x231   : > { %3302 = vst [vmem:[%s4701_s12 + $0x290] sm:$0xf] %v3825_v54  ;;  %v3824_v58 = vpack.c.bf16 %v1638_v57, %v1636_v55 }
 0x232   : > { %v1938_v59 = vpop.f32.mrf.mxu1  ;;  %v1640_v61 = vpop.f32.mrf.mxu0 }
 0x233   : > { %v3827_v60 = vpack.c.bf16 %v1938_v59, %v1938_v59  ;;  %3301 = vst [vmem:[%s4701_s12 + $0x288] sm:$0xff] %v3824_v58 }
 0x234   : > { %v1940_v62 = vpop.f32.mrf.mxu1  ;;  %v1642_v63 = vpop.f32.mrf.mxu0 }
 0x235   : > { %3304 = vst [vmem:[%s4701_s12 + $0x29c] sm:$0xf] %v3827_v60  ;;  %v3826_v0 = vpack.c.bf16 %v1642_v63, %v1640_v61 }
 0x236   : > { %v1943_v1 = vpop.f32.mrf.mxu1  ;;  %v1646_v3 = vpop.f32.mrf.mxu0 }
 0x237   : > { %v3829_v2 = vpack.c.bf16 %v1943_v1, %v1943_v1  ;;  %3303 = vst [vmem:[%s4701_s12 + $0x294] sm:$0xff] %v3826_v0 }
 0x238   : > { %v1945_v4 = vpop.f32.mrf.mxu1  ;;  %v1648_v5 = vpop.f32.mrf.mxu0 }
 0x239   : > { %3306 = vst [vmem:[%s4701_s12 + $0x2a8] sm:$0xf] %v3829_v2  ;;  %v3828_v6 = vpack.c.bf16 %v1648_v5, %v1646_v3 }
 0x23a   : > { %v1946_v7 = vpop.f32.mrf.mxu1  ;;  %v1650_v9 = vpop.f32.mrf.mxu0 }
 0x23b   : > { %v3831_v8 = vpack.c.bf16 %v1946_v7, %v1946_v7  ;;  %3305 = vst [vmem:[%s4701_s12 + $0x2a0] sm:$0xff] %v3828_v6 }
 0x23c   : > { %v1948_v10 = vpop.f32.mrf.mxu1  ;;  %v1652_v11 = vpop.f32.mrf.mxu0 }
 0x23d   : > { %3308 = vst [vmem:[%s4701_s12 + $0x2b4] sm:$0xf] %v3831_v8  ;;  %v3830_v12 = vpack.c.bf16 %v1652_v11, %v1650_v9 }
 0x23e   : > { %v1951_v13 = vpop.f32.mrf.mxu1  ;;  %v1656_v15 = vpop.f32.mrf.mxu0 }
 0x23f   : > { %v3833_v14 = vpack.c.bf16 %v1951_v13, %v1951_v13  ;;  %3307 = vst [vmem:[%s4701_s12 + $0x2ac] sm:$0xff] %v3830_v12 }
 0x240   : > { %v1953_v16 = vpop.f32.mrf.mxu1  ;;  %v1658_v17 = vpop.f32.mrf.mxu0 }
 0x241   : > { %3310 = vst [vmem:[%s4701_s12 + $0x2c0] sm:$0xf] %v3833_v14  ;;  %v3832_v18 = vpack.c.bf16 %v1658_v17, %v1656_v15 }
 0x242   : > { %v1954_v19 = vpop.f32.mrf.mxu1  ;;  %v1660_v21 = vpop.f32.mrf.mxu0 }
 0x243   : > { %v3835_v20 = vpack.c.bf16 %v1954_v19, %v1954_v19  ;;  %3309 = vst [vmem:[%s4701_s12 + $0x2b8] sm:$0xff] %v3832_v18 }
 0x244   : > { %v1956_v22 = vpop.f32.mrf.mxu1  ;;  %v1662_v23 = vpop.f32.mrf.mxu0 }
 0x245   : > { %3312 = vst [vmem:[%s4701_s12 + $0x2cc] sm:$0xf] %v3835_v20  ;;  %v3834_v24 = vpack.c.bf16 %v1662_v23, %v1660_v21 }
 0x246   : > { %v1959_v25 = vpop.f32.mrf.mxu1  ;;  %v1666_v27 = vpop.f32.mrf.mxu0 }
 0x247   : > { %v3837_v26 = vpack.c.bf16 %v1959_v25, %v1959_v25  ;;  %3311 = vst [vmem:[%s4701_s12 + $0x2c4] sm:$0xff] %v3834_v24 }
 0x248   : > { %v1961_v28 = vpop.f32.mrf.mxu1  ;;  %v1668_v29 = vpop.f32.mrf.mxu0 }
 0x249   : > { %3314 = vst [vmem:[%s4701_s12 + $0x2d8] sm:$0xf] %v3837_v26  ;;  %v3836_v30 = vpack.c.bf16 %v1668_v29, %v1666_v27 }
 0x24a   : > { %v1962_v31 = vpop.f32.mrf.mxu1  ;;  %v1670_v33 = vpop.f32.mrf.mxu0 }
 0x24b   : > { %v3839_v32 = vpack.c.bf16 %v1962_v31, %v1962_v31  ;;  %3313 = vst [vmem:[%s4701_s12 + $0x2d0] sm:$0xff] %v3836_v30 }
 0x24c   : > { %v1964_v34 = vpop.f32.mrf.mxu1  ;;  %v1672_v35 = vpop.f32.mrf.mxu0 }
 0x24d   : > { %3316 = vst [vmem:[%s4701_s12 + $0x2e4] sm:$0xf] %v3839_v32  ;;  %v3838_v36 = vpack.c.bf16 %v1672_v35, %v1670_v33 }
 0x24e   : > { %v1967_v37 = vpop.f32.mrf.mxu1  ;;  %v1676_v39 = vpop.f32.mrf.mxu0 }
 0x24f   : > { %v3841_v38 = vpack.c.bf16 %v1967_v37, %v1967_v37  ;;  %3315 = vst [vmem:[%s4701_s12 + $0x2dc] sm:$0xff] %v3838_v36 }
 0x250   : > { %v1969_v40 = vpop.f32.mrf.mxu1  ;;  %v1678_v41 = vpop.f32.mrf.mxu0 }
 0x251   : > { %3318 = vst [vmem:[%s4701_s12 + $0x2f0] sm:$0xf] %v3841_v38  ;;  %v3840_v42 = vpack.c.bf16 %v1678_v41, %v1676_v39 }
 0x252   : > { %v1970_v43 = vpop.f32.mrf.mxu1  ;;  %v1680_v45 = vpop.f32.mrf.mxu0 }
 0x253   : > { %v3843_v44 = vpack.c.bf16 %v1970_v43, %v1970_v43  ;;  %3317 = vst [vmem:[%s4701_s12 + $0x2e8] sm:$0xff] %v3840_v42 }
 0x254   : > { %v1972_v46 = vpop.f32.mrf.mxu1  ;;  %v1682_v47 = vpop.f32.mrf.mxu0 }
 0x255   : > { %3320 = vst [vmem:[%s4701_s12 + $0x2fc] sm:$0xf] %v3843_v44  ;;  %v3842_v48 = vpack.c.bf16 %v1682_v47, %v1680_v45 }
 0x257   : > { %3319 = vst [vmem:[%s4701_s12 + $0x2f4] sm:$0xff] %v3842_v48 }
 0x258   : > { %4217 = shalt.err (!%p4214_p12)
}
 0x259   : > { %s4218_s28 = scalar_lea.hbm %s4848_s26, 12288  ;;  %s4222_s5 = scalar_lea.hbm %s4961_s23, 49152 }
 0x25a   : > { %p4219_p3 = scmp.ne.s32.totalorder %s4848_s26, %s4218_s28  ;;  %p4223_p13 = scmp.lt.s32.totalorder %s4848_s26, %s4961_s23 }
 0x25b   : > { %p4224_p0 = scmp.lt.s32.totalorder %s4222_s5, %s4218_s28 }
 0x25c   : > { %p4220_p7 = pnand %p4219_p3, %p4532_p1 }
 0x25d   : > { %p4225_p6 = por %p4224_p0, %p4223_p13 }
 0x25e   : > { %p4221_p8 = pneg %p4220_p7 }
 0x260   : > { %p4226_p11 = pnand %p4225_p6, %p4221_p8 }
 0x262   : > { %4229 = shalt.err (!%p4226_p11)
}
 0x263   : > { %s4363_s27 = smov 192   ;;  %s4364_s18 = smov 384  }
 0x264   : > { %s4365_s7 = smov 12  }
 0x265   : > { %3852 = dma.vmem_to_hbm [thread:$0]  (%p4532_p1), %s4851_s19, 12288, %s4848_s26, %s4856_s8, %s4363_s27, %s4364_s18, %s4365_s7  }
 0x266 PF: > { %p3866_p9 = scmp.ge.s32.totalorder %s4352_s22, 2  ;;  %s3353_s29 = sand.u32 1, %s4300_s9  }
 0x267   : > { %s3354_s20 = scalar_lea.sflag [#allocation5], %s3353_s29 }
 0x268   : > { %p3862_p4 = pnand %p3866_p9, %p4547_p2 }
 0x26a   : > { %p3863_p5 = pneg %p3862_p4 }
 0x26c   : > { %4295 = dma.done.wait (%p3863_p5), %s3354_s20, 12288  }
 0x26d   : > { %4297 = vsyncadd (%p3863_p5), %s3354_s20, 4294955008  ;;  %s21_s22 = sadd.s32 1, %s4352_s22   ;;  %s4963_s30 = sld [smem:[#allocation17_spill]] }
 0x26e   : > { %p4884_p10 = scmp.ge.s32.totalorder %s21_s22, 6   ;;  %s4964_s18 = sld [smem:[#allocation13_spill]] }
 0x26f   : > { %s4965_s19 = sld [smem:[#allocation14_spill]]  ;;  %s4969_s9 = smov %s4304_s10 }
 0x270   : > { %s4966_s20 = sld [smem:[#allocation15_spill]]  ;;  %s4970_s10 = smov %s4308_s11 }
 0x271   : > { %s4967_s4 = sld [smem:[#allocation16_spill]]  ;;  %s4971_s11 = smov %s4544_s0 }
 0x272   : > { %s4972_s12 = smov %s4316_s13  ;;  %s4973_s13 = smov %s4320_s14 }
 0x273   : > { %s4974_s14 = smov %s4526_s15  ;;  %s4975_s15 = smov %s4328_s16 }
 0x274   : > { %s4976_s16 = smov %s4332_s17  ;;  %s4977_s17 = smov %s4963_s30 }
 0x275   :  { %20 = sbr.rel (!%p4884_p10) target bundleno = 15 (0xf), region = 94 }
 0x277   : > { %s4978_s21 = smov %s4967_s4 }
 0x27a   :  { %3359 = vsyncpa [#allocation4], 1 }
 0x27b   :  { %3361 = vsyncpa [#allocation4 + $0x1], 1 }
 0x27c   :  { %3362 = vsyncpa [#allocation7], 1 }
 0x27d   :  { %3364 = vsyncpa [#allocation7 + $0x1], 1 }
 0x27e   :  { %3365 = vsyncpa [#allocation5], 1 }
 0x27f   :  { %3367 = vsyncpa [#allocation5 + $0x1], 1 }

</bundles_post_ra>
